<compile_context>
chip_gen: v6e
topology: v6e:2x2x1
jax: 0.10.0
libtpu: 0.0.40
codegen_flags: <defaults>
</compile_context>

<pallas_src>
import jax
import jax.numpy as jnp
from jax.experimental import pallas as pl
from jax.experimental.pallas import tpu as pltpu


_LANES = 128
_MIN_PALLAS_BYTES = 2 * 2**20      # below this total traffic, fused jnp wins
_FLOOR_TILE_ROWS = 512             # don't shrink tiles below this just to shape the grid


def _vmem_tile_budget_and_cap():
    """Return (bytes usable for double-buffered tiles, physical VMEM capacity)."""
    cap = 64 * 2**20               # conservative default = v7x per-TC VMEM
    try:
        info = pltpu.get_tpu_info()
        c = int(getattr(info, "vmem_capacity_bytes", 0) or 0)
        if c > 0:
            cap = c
    except Exception:
        pass
    # ~3/8 of physical for our tiles: ~24 MiB on v7x (64 MiB), ~48 MiB on v5e/v6e (128 MiB).
    budget = min(max(cap * 3 // 8, 12 * 2**20), 48 * 2**20)
    return budget, cap


def _min_rows_for_dtype(dtype):
    """Minimum sublane-tile rows for a dtype: 8 f32, 16 bf16, 32 int8/fp8."""
    itemsize = jnp.dtype(dtype).itemsize
    return 8 * max(1, 4 // itemsize)


def _pick_tile_rows(rows, min_rows, max_rows):
    """Largest tile_r (multiple of min_rows, divisor of rows, <= max_rows),
    preferring an even >=2-step grid and a >= _FLOOR_TILE_ROWS tile."""
    q = rows // min_rows
    divs = set()
    i = 1
    while i * i <= q:
        if q % i == 0:
            divs.add(i)
            divs.add(q // i)
        i += 1
    limit = max(max_rows, min_rows)
    cands = sorted(d * min_rows for d in divs if d * min_rows <= limit)
    floor = min(_FLOOR_TILE_ROWS, rows // 2) if rows >= 2 * min_rows else min_rows
    for pred in (
        lambda t: rows // t >= 2 and (rows // t) % 2 == 0 and t >= floor,
        lambda t: rows // t >= 2 and t >= floor,
        lambda t: rows // t >= 2,
        lambda t: True,
    ):
        tier = [t for t in cands if pred(t)]
        if tier:
            return max(tier)
    return min_rows


def _make_weighted_sum_kernel(lams, out_dtype):
    """Kernel over N same-shape (tile_r, L) tiles.

    Lambdas are compile-time Python constants (immediate VPU multiplies);
    accumulation is f32 regardless of the input dtype. Deliberately just
    N vlds + adds + 1 vst: the kernel is HBM-bandwidth-bound on all chips.
    """
    lams = tuple(float(l) for l in lams)

    def kernel(*refs):
        out_ref = refs[-1]
        in_refs = refs[:-1]
        acc = None
        for lam, ref in zip(lams, in_refs):
            x = ref[...].astype(jnp.float32)        # bf16 inputs read natively
            term = x if lam == 1.0 else lam * x     # skip multiply-by-1
            acc = term if acc is None else acc + term
        out_ref[...] = acc.astype(out_dtype)

    return kernel


class SumLossWrapperPallas:
    """JAX/Pallas port of SumLossWrapper."""

    def __init__(self, output_names, lambda_dict=None):
        if lambda_dict is None:
            lambda_dict = {}
        lambda_dict = dict(lambda_dict)
        for output_name in output_names:
            if output_name not in lambda_dict:
                lambda_dict[output_name] = 1
        self.lambda_dict = lambda_dict

    def __call__(self, loss_dict):
        names = list(loss_dict.keys())
        losses = [jnp.asarray(loss_dict[nm]) for nm in names]
        lams = [self.lambda_dict[nm] for nm in names]

        out = self._try_pallas(losses, lams)
        if out is not None:
            return out

        # Fast path: let XLA fuse the handful of multiplies/adds. This also
        # reproduces PyTorch's broadcasting `loss += lam * loss_i` semantics
        # for mismatched shapes, and is strictly faster for scalar/tiny losses.
        total = 0
        for lam, l in zip(lams, losses):
            total = total + lam * l
        return total

    def _try_pallas(self, losses, lams):
        n = len(losses)
        if n == 0:
            return None
        if len({l.shape for l in losses}) != 1:
            return None                       # identical shapes only
        shape = losses[0].shape
        if len(shape) < 2:
            return None
        lanes = shape[-1]
        if lanes % _LANES != 0:
            return None                       # flatten would be a relayout copy

        out_dtype = jnp.result_type(*losses)
        dtypes = [l.dtype for l in losses] + [out_dtype]
        min_rows = max(_min_rows_for_dtype(dt) for dt in dtypes)
        if shape[-2] % min_rows != 0:
            return None                       # sublane padding -> merge = relayout

        rows = 1
        for d in shape[:-1]:
            rows *= d
        if rows % min_rows != 0:
            return None

        total_bytes = sum(l.size * jnp.dtype(l.dtype).itemsize for l in losses)
        if total_bytes < _MIN_PALLAS_BYTES:
            return None                       # launch/DMA overhead would dominate

        # Double-buffered bytes per tile row: every input + the output, actual dtypes.
        per_row_bytes = sum(2 * lanes * jnp.dtype(dt).itemsize for dt in dtypes)
        budget, cap = _vmem_tile_budget_and_cap()
        max_rows = (budget // per_row_bytes) // min_rows * min_rows
        if max_rows < min_rows:
            return None                       # even the minimum tile would not fit VMEM

        tile_r = _pick_tile_rows(rows, min_rows, max_rows)
        footprint = tile_r * per_row_bytes    # already includes double-buffering
        vmem_limit = int(min(cap, max(footprint + 4 * 2**20, 16 * 2**20)))

        # Layout-free: only leading dims are merged; last two dims have no padding
        # (guaranteed by the gates above), so this reshape is a bitcast on TPU.
        flat = [l.reshape(rows, lanes) for l in losses]

        kernel = _make_weighted_sum_kernel(lams, out_dtype)
        block = pl.BlockSpec((tile_r, lanes), lambda i: (i, 0))

        out = pl.pallas_call(
            kernel,
            out_shape=jax.ShapeDtypeStruct((rows, lanes), out_dtype),
            grid=(rows // tile_r,),           # exact division: no ragged final block
            in_specs=[block] * n,
            out_specs=block,
            compiler_params=pltpu.CompilerParams(
                # TODO(synk): verify "parallel" really shards the row grid across
                # v7x's two TensorCores; if not, switch to an explicit per-core split.
                dimension_semantics=("parallel",),
                vmem_limit_bytes=vmem_limit,
            ),
        )(*flat)
        return out.reshape(shape)


if __name__ == "__main__":
    key = jax.random.PRNGKey(0)
    ks = jax.random.split(key, 12)

    output_names = ["ce", "dice", "aux"]
    lambda_dict = {"ce": 1.0, "dice": 0.5}     # "aux" defaults to 1
    wrapper = SumLossWrapperPallas(output_names, lambda_dict)

    # 1) f32 per-pixel loss maps, lane-aligned, 3 MiB total -> Pallas path.
    shape_f32 = (2, 8, 128, 128)               # rows = 2048, 1 MiB per input
    d_f32 = {
        "ce": jax.random.uniform(ks[0], shape_f32, dtype=jnp.float32),
        "dice": jax.random.uniform(ks[1], shape_f32, dtype=jnp.float32),
        "aux": jax.random.uniform(ks[2], shape_f32, dtype=jnp.float32),
    }
    got = jax.block_until_ready(wrapper(d_f32))
    ref = sum(wrapper.lambda_dict[k] * v for k, v in d_f32.items())
    assert got.shape == shape_f32 and got.dtype == jnp.float32
    assert jnp.allclose(got, ref, rtol=1e-6, atol=1e-6)

    # 2) bf16 loss maps -> Pallas path, native bf16 reads, f32 accumulation,
    #    dtype-aware 16-row minimum tile.
    shape_bf = (4, 8, 128, 128)                 # rows = 4096, 1 MiB per bf16 input
    d_bf = {
        "ce": jax.random.uniform(ks[3], shape_bf, dtype=jnp.float32).astype(jnp.bfloat16),
        "dice": jax.random.uniform(ks[4], shape_bf, dtype=jnp.float32).astype(jnp.bfloat16),
        "aux": jax.random.uniform(ks[5], shape_bf, dtype=jnp.float32).astype(jnp.bfloat16),
    }
    got_bf = jax.block_until_ready(wrapper(d_bf))
    ref_bf = sum(
        wrapper.lambda_dict[k] * v.astype(jnp.float32) for k, v in d_bf.items()
    )
    assert got_bf.dtype == jnp.bfloat16
    assert jnp.allclose(got_bf.astype(jnp.float32), ref_bf, rtol=2e-2, atol=2e-2)

    # 3) Scalar losses (the typical usage) -> fused jnp fast path, no kernel.
    d_s = {
        "ce": jax.random.uniform(ks[6], (), dtype=jnp.float32),
        "dice": jax.random.uniform(ks[7], (), dtype=jnp.float32),
        "aux": jax.random.uniform(ks[8], (), dtype=jnp.float32),
    }
    got_s = jax.block_until_ready(wrapper(d_s))
    ref_s = sum(wrapper.lambda_dict[k] * v for k, v in d_s.items())
    assert jnp.allclose(got_s, ref_s, rtol=1e-6, atol=1e-6)

    # 4) Small non-lane-aligned maps (flatten would be a relayout) -> jnp fallback.
    shape_small = (2, 4, 16, 16)
    d_small = {
        "ce": jax.random.uniform(ks[9], shape_small, dtype=jnp.float32),
        "dice": jax.random.uniform(ks[10], shape_small, dtype=jnp.float32),
        "aux": jax.random.uniform(ks[11], shape_small, dtype=jnp.float32),
    }
    got_small = jax.block_until_ready(wrapper(d_small))
    ref_small = sum(wrapper.lambda_dict[k] * v for k, v in d_small.items())
    assert got_small.shape == shape_small
    assert jnp.allclose(got_small, ref_small, rtol=1e-6, atol=1e-6)

    print("KERNEL_OK")
</pallas_src>

<mosaic_0001>
module attributes {stable_mosaic.version = 11 : i64} {
  func.func @kernel(%arg0: i32, %arg1: memref<1024x128xf32, #tpu.memory_space<vmem>>, %arg2: memref<1024x128xf32, #tpu.memory_space<vmem>>, %arg3: memref<1024x128xf32, #tpu.memory_space<vmem>>, %arg4: memref<1024x128xf32, #tpu.memory_space<vmem>>) attributes {dimension_semantics = [#tpu.dimension_semantics<parallel>], iteration_bounds = array<i64: 2>, scalar_prefetch = 0 : i64, scratch_operands = 0 : i64, tpu.core_type = #tpu.core_type<tc>, window_params = [{transform_indices = @transform_0, window_bounds = array<i64: 1024, 128>}, {transform_indices = @transform_1, window_bounds = array<i64: 1024, 128>}, {transform_indices = @transform_2, window_bounds = array<i64: 1024, 128>}, {transform_indices = @transform_3, window_bounds = array<i64: 1024, 128>}]} {
    %c0 = arith.constant 0 : index
    %c0_0 = arith.constant 0 : index
    %0 = vector.load %arg1[%c0, %c0_0] : memref<1024x128xf32, #tpu.memory_space<vmem>>, vector<1024x128xf32>
    %c0_1 = arith.constant 0 : index
    %c0_2 = arith.constant 0 : index
    %1 = vector.load %arg2[%c0_1, %c0_2] : memref<1024x128xf32, #tpu.memory_space<vmem>>, vector<1024x128xf32>
    %cst = arith.constant 5.000000e-01 : f32
    %2 = vector.broadcast %cst : f32 to vector<1024x128xf32>
    %3 = arith.mulf %2, %1 : vector<1024x128xf32>
    %4 = arith.addf %0, %3 : vector<1024x128xf32>
    %c0_3 = arith.constant 0 : index
    %c0_4 = arith.constant 0 : index
    %5 = vector.load %arg3[%c0_3, %c0_4] : memref<1024x128xf32, #tpu.memory_space<vmem>>, vector<1024x128xf32>
    %6 = arith.addf %4, %5 : vector<1024x128xf32>
    %c0_5 = arith.constant 0 : index
    %c0_6 = arith.constant 0 : index
    %7 = vector.load %arg4[%c0_5, %c0_6] : memref<1024x128xf32, #tpu.memory_space<vmem>>, vector<1024x128xf32>
    tpu.vector_store %arg4[%c0_5, %c0_6], %6 {strides = array<i32>} : memref<1024x128xf32, #tpu.memory_space<vmem>>, vector<1024x128xf32>,
    return
  }
  func.func @transform_0(%arg0: i32) -> (i32, i32) {
    %c0_i32 = arith.constant 0 : i32
    %c0_i32_0 = arith.constant 0 : i32
    return %arg0, %c0_i32 : i32, i32
  }
  func.func @transform_1(%arg0: i32) -> (i32, i32) {
    %c0_i32 = arith.constant 0 : i32
    %c0_i32_0 = arith.constant 0 : i32
    return %arg0, %c0_i32 : i32, i32
  }
  func.func @transform_2(%arg0: i32) -> (i32, i32) {
    %c0_i32 = arith.constant 0 : i32
    %c0_i32_0 = arith.constant 0 : i32
    return %arg0, %c0_i32 : i32, i32
  }
  func.func @transform_3(%arg0: i32) -> (i32, i32) {
    %c0_i32 = arith.constant 0 : i32
    %c0_i32_0 = arith.constant 0 : i32
    return %arg0, %c0_i32 : i32, i32
  }
}

</mosaic_0001>

<bundles_post_ra>
// kernel: tpu_custom_call.1
= control target key start
LH: loop header
LB: loop body
LE: loop exit
PB: predicated region body
PF: predicated region fallthrough
CT: control target
= control target key end

     0   :  { %s2333_s0 = inlined_call_operand.hbm [shape: f32[2048,128], index: 0, kind: input, shape index: {}]   ;;  %s2334_s1 = inlined_call_operand.hbm [shape: f32[2048,128], index: 1, kind: input, shape index: {}]   ;;  %s2335_s2 = inlined_call_operand.hbm [shape: f32[2048,128], index: 2, kind: input, shape index: {}]   ;;  %s2336_s3 = inlined_call_operand.hbm [shape: f32[2048,128], index: 3, kind: output, shape index: {}]  }
   0x1   :  { %2343 = sst [smem:[#allocation12_spill]] %s2333_s0 }
   0x2   :  { %2344 = sst [smem:[#allocation13_spill]] %s2334_s1 }
   0x3   :  { %8 = vsyncpa [#allocation3], 0 }
   0x4   :  { %10 = vsyncpa [#allocation3 + $0x1], 0 }
   0x5   :  { %11 = vsyncpa [#allocation6], 0 }
   0x6   :  { %13 = vsyncpa [#allocation6 + $0x1], 0 }
   0x7   :  { %14 = vsyncpa [#allocation4], 0 }
   0x8   :  { %16 = vsyncpa [#allocation4 + $0x1], 0  ;;  %s1564_s12 = smov 0   ;;  %s1566_s13 = smov 0  }
   0x9   :  { %s1568_s14 = smov 0   ;;  %s1570_s15 = smov 0  }
   0xa LB: > { %s1585_s16 = sadd.s32 4294967295, %s1534_s15   ;;  %s1296_s17 = sadd.s32 4294967294, %s1534_s15   ;;  %s1534_s15 = sphi %s1570_s15, %s2364_s15   ;;  %s1530_s14 = sphi %s1568_s14, %s2363_s14   ;;  %s1526_s13 = sphi %s1566_s13, %s2362_s13   ;;  %s1522_s12 = sphi %s1564_s12, %s2361_s12  }
   0xb   : > { %s1589_s18 = sadd.s32 1, %s1534_s15   ;;  %s29_s19 = sadd.s32 1, %s1530_s14 }
   0xc   : > { %s26_s20 = ssub.s32 %s1534_s15, %s1589_s18  ;;  %p36_p0 = scmp.ne.s32.totalorder %s1530_s14, %s1526_s13 }
   0xd   : > { %p27_p1 = scmp.eq.s32.totalorder %s26_s20, 0  ;;  %p37_p2 = scmp.eq.s32.totalorder %s1534_s15, 0 }
   0xe   : > { %p42_p3 = scmp.ne.s32.totalorder %s1526_s13, %s1522_s12  ;;  %p43_p4 = scmp.eq.s32.totalorder %s1585_s16, 0 }
   0xf   : > { %s1601_s21 = scalar_select %p27_p1, %s1530_s14, %s29_s19  }
  0x10   : > { %p38_p5 = por %p37_p2, %p36_p0  ;;  %p1603_p6 = por %p43_p4, %p42_p3 }
  0x11   : > { %p118_p7 = scmp.eq.s32.totalorder %s1585_s16, 1  ;;  %p124_p8 = scmp.eq.s32.totalorder %s1296_s17, 1 }
  0x12   : > { %s2345_s22 = scalar_select %p1603_p6, 1, 0 }
  0x13   : > { %p1344_p10 = scmp.lt.s32.totalorder %s1534_s15, 2  ;;  %p1610_p11 = por %p118_p7, %p36_p0 }
  0x14   : > { %p1614_p12 = por %p124_p8, %p42_p3  ;;  %s144_s25 = sand.u32 1, %s1530_s14  }
  0x15   : > { %s2346_s23 = scalar_select %p1610_p11, 1, 0 }
  0x16   : > { %s2347_s24 = scalar_select %p1614_p12, 1, 0 }
  0x17   : > { %s1620_s26 = sshll.u32 %s1534_s15, 14  ;;  %s1624_s27 = sshll.u32 %s144_s25, 10 }
  0x18   : > { %p1626_p13 = pnand %p1344_p10, %p38_p5  ;;  %s165_s29 = sand.u32 1, %s1534_s15  }
  0x19   : > { %s2349_s1 = sld [smem:[#allocation13_spill]]  ;;  %s169_s6 = scalar_lea.vmem [#allocation5], %s1624_s27 }
  0x1a   : > { %s176_s7 = sshll.u32 %s169_s6, 4  ;;  %s1641_s8 = scalar_lea.sflag [#allocation6], %s165_s29  ;;  %s1638_s7 = int_to_ptr.vmem [resolvable:$true] %s176_s7 }
  0x1b   : > { %p1647_p2 = pneg %p1626_p13 }
  0x1f   : > { %s1635_s5 = scalar_lea.hbm %s2349_s1, %s1620_s26  ;;  %s1387_s19 = scalar_lea.hbm %s2349_s1, 32768 }
  0x20   : > { %s1382_s9 = scalar_lea.hbm %s1635_s5, 16384  ;;  %p1388_p5 = scmp.lt.s32.totalorder %s1635_s5, %s2349_s1 }
  0x21   : > { %p1383_p1 = scmp.ne.s32.totalorder %s1635_s5, %s1382_s9  ;;  %p1389_p7 = scmp.lt.s32.totalorder %s1387_s19, %s1382_s9 }
  0x23   : > { %p1385_p3 = pnand %p1647_p2, %p1383_p1  ;;  %p1390_p8 = por %p1389_p7, %p1388_p5 }
  0x25   : > { %p1386_p4 = pneg %p1385_p3 }
  0x27   : > { %p1391_p10 = pnand %p1390_p8, %p1386_p4 }
  0x29   : > { %1394 = shalt.err (!%p1391_p10)
}
  0x2a   : > { %s1395_s29 = scalar_lea.vmem %s1638_s7, 16384  ;;  %s1536_s4 = smov [#allocation5]  }
  0x2b   : > { %p1396_p9 = scmp.ne.s32.totalorder %s1638_s7, %s1395_s29  ;;  %s1400_s6 = sshll.u32 %s1536_s4, 4  ;;  %s1401_s6 = int_to_ptr.vmem [resolvable:$false] %s1400_s6 }
  0x2c   : > { %s1402_s11 = scalar_lea.vmem %s1401_s6, 32768  ;;  %p1403_p0 = scmp.lt.s32.totalorder %s1638_s7, %s1401_s6 }
  0x2d   : > { %p1398_p1 = pnand %p1396_p9, %p1647_p2  ;;  %p1404_p12 = scmp.lt.s32.totalorder %s1402_s11, %s1395_s29 }
  0x2f   : > { %p1399_p3 = pneg %p1398_p1  ;;  %p1405_p11 = por %p1404_p12, %p1403_p0 }
  0x31   : > { %p1406_p6 = pnand %p1405_p11, %p1399_p3 }
  0x33   : > { %1409 = shalt.err (!%p1406_p6)
}
  0x34   : > { %s2339_s9 = smov 128   ;;  %s2341_s17 = smov 8  }
  0x35   : > { %1336 = dma.hbm_to_vmem [thread:$0]  (!%p1626_p13), %s1635_s5, 16384, %s1638_s7, %s1641_s8, %s2339_s9, %s2339_s9, %s2341_s17  }
  0x36   : > { %p205_p9 = scmp.lt.s32.totalorder %s1534_s15, 3  ;;  %s2351_s0 = sld [smem:[#allocation12_spill]] }
  0x37   : > { %p2352_p6 = scmp.ge.s32.totalorder %s1534_s15, 1  ;;  %s148_s4 = scalar_lea.vmem [#allocation2], %s1624_s27 }
  0x38   : > { %s155_s6 = sshll.u32 %s148_s4, 4  ;;  %s145_s5 = scalar_lea.sflag [#allocation3], %s144_s25  ;;  %s1687_s6 = int_to_ptr.vmem [resolvable:$true] %s155_s6 }
  0x39   : > { %p1682_p11 = pnand %p2352_p6, %p205_p9 }
  0x3b   : > { %s2353_s29 = scalar_select %p1682_p11, 1, 0 }
  0x3c   : > { %s1678_s30 = scalar_lea.hbm %s2351_s0, %s1620_s26  ;;  %s1415_s20 = scalar_lea.hbm %s2351_s0, 32768 }
  0x3d   : > { %s1410_s7 = scalar_lea.hbm %s1678_s30, 16384  ;;  %p1416_p5 = scmp.lt.s32.totalorder %s1678_s30, %s2351_s0 }
  0x3e   : > { %p1411_p12 = scmp.ne.s32.totalorder %s1678_s30, %s1410_s7  ;;  %p1417_p7 = scmp.lt.s32.totalorder %s1415_s20, %s1410_s7 }
  0x40   : > { %p1413_p0 = pnand %p1411_p12, %p1647_p2  ;;  %p1418_p8 = por %p1417_p7, %p1416_p5 }
  0x42   : > { %p1414_p4 = pneg %p1413_p0 }
  0x44   : > { %p1419_p10 = pnand %p1418_p8, %p1414_p4 }
  0x46   : > { %1422 = shalt.err (!%p1419_p10)
}
  0x47   : > { %s1423_s25 = scalar_lea.vmem %s1687_s6, 16384  ;;  %s1539_s4 = smov [#allocation2]  }
  0x48   : > { %p1424_p1 = scmp.ne.s32.totalorder %s1687_s6, %s1423_s25  ;;  %s1428_s11 = sshll.u32 %s1539_s4, 4  ;;  %s1429_s11 = int_to_ptr.vmem [resolvable:$false] %s1428_s11 }
  0x49   : > { %s1430_s19 = scalar_lea.vmem %s1429_s11, 32768  ;;  %p1431_p6 = scmp.lt.s32.totalorder %s1687_s6, %s1429_s11 }
  0x4a   : > { %p1426_p3 = pnand %p1424_p1, %p1647_p2  ;;  %p1432_p12 = scmp.lt.s32.totalorder %s1430_s19, %s1423_s25 }
  0x4c   : > { %p1427_p9 = pneg %p1426_p3  ;;  %p1433_p0 = por %p1432_p12, %p1431_p6 }
  0x4e   : > { %p1434_p11 = pnand %p1433_p0, %p1427_p9 }
  0x50   : > { %1437 = shalt.err (!%p1434_p11)
}
  0x51   : > { %s2354_s9 = smov 8   ;;  %s2355_s17 = smov 128  }
  0x52   : > { %1333 = dma.hbm_to_vmem [thread:$0]  (!%p1626_p13), %s1678_s30, 16384, %s1687_s6, %s145_s5, %s2355_s17, %s2355_s17, %s2354_s9  }
  0x53   : > { %s1718_s4 = scalar_lea.hbm %s2335_s2, %s1620_s26  ;;  %s190_s25 = scalar_lea.vmem [#allocation7], %s1624_s27 }
  0x54   : > { %s197_s11 = sshll.u32 %s190_s25, 4  ;;  %s1438_s19 = scalar_lea.hbm %s1718_s4, 16384  ;;  %s198_s11 = int_to_ptr.vmem [resolvable:$true] %s197_s11 }
  0x55   : > { %p1439_p11 = scmp.ne.s32.totalorder %s1718_s4, %s1438_s19  ;;  %s1443_s30 = scalar_lea.hbm %s2335_s2, 32768 }
  0x56   : > { %p1444_p7 = scmp.lt.s32.totalorder %s1718_s4, %s2335_s2  ;;  %p1445_p8 = scmp.lt.s32.totalorder %s1443_s30, %s1438_s19 }
  0x57   : > { %p1441_p4 = pnand %p1439_p11, %p1647_p2 }
  0x58   : > { %p1446_p10 = por %p1445_p8, %p1444_p7 }
  0x59   : > { %p1442_p5 = pneg %p1441_p4 }
  0x5b   : > { %p1447_p1 = pnand %p1446_p10, %p1442_p5 }
  0x5d   : > { %1450 = shalt.err (!%p1447_p1)
}
  0x5e   : > { %s1451_s26 = scalar_lea.vmem %s198_s11, 16384  ;;  %s1540_s27 = smov [#allocation7]  }
  0x5f   : > { %p1452_p3 = scmp.ne.s32.totalorder %s198_s11, %s1451_s26  ;;  %s1456_s7 = sshll.u32 %s1540_s27, 4  ;;  %s1457_s7 = int_to_ptr.vmem [resolvable:$false] %s1456_s7 }
  0x60   : > { %s1458_s20 = scalar_lea.vmem %s1457_s7, 32768  ;;  %p1459_p12 = scmp.lt.s32.totalorder %s198_s11, %s1457_s7 }
  0x61   : > { %p1454_p9 = pnand %p1452_p3, %p1647_p2  ;;  %p1460_p0 = scmp.lt.s32.totalorder %s1458_s20, %s1451_s26 }
  0x63   : > { %p1455_p6 = pneg %p1454_p9  ;;  %p1461_p11 = por %p1460_p0, %p1459_p12 }
  0x65   : > { %p1462_p4 = pnand %p1461_p11, %p1455_p6 }
  0x67   : > { %1465 = shalt.err (!%p1462_p4)
}
  0x68   : > { %1339 = dma.hbm_to_vmem [thread:$0]  (!%p1626_p13), %s1718_s4, 16384, %s198_s11, %s1641_s8, %s2355_s17, %s2355_s17, %s2354_s9  }
  0x69   : > { %p2356_p2 = scmp.ne.s32.totalorder %s2353_s29, 0 }
  0x6a   : > { %s1744_s0 = sand.u32 (!%p2356_p2), 1, %s1526_s13   ;;  %p2357_p5 = scmp.ne.s32.totalorder (!%p2356_p2), %s2345_s22, 0 }
  0x6b   : > { %209 = sbr.rel (%p2356_p2) target bundleno = 273 (0x111), region = 32  ;;  %s1747_s1 = sshll.u32 (!%p2356_p2), %s1744_s0, 10 }
  0x6c   : > { %s212_s10 = scalar_lea.sflag (!%p2356_p2), [#allocation3], %s1744_s0  ;;  %s1751_s28 = scalar_lea.vmem (!%p2356_p2), [#allocation2], %s1747_s1 }
  0x70   : > { %1509 = dma.done.wait (%p2357_p5), %s212_s10, 16384  }
  0x71   : > { %1511 = vsyncadd (%p2357_p5), %s212_s10, 4294950912  ;;  %s220_s8 = sand.u32 1, %s1585_s16   ;;  %s1759_s9 = scalar_lea.vmem [#allocation5], %s1747_s1 }
  0x72   : > { %s221_s29 = scalar_lea.sflag [#allocation6], %s220_s8 }
  0x73   : > { %1513 = dma.done.wait (%p2357_p5), %s221_s29, 32768  }
  0x74   : > { %1515 = vsyncadd (%p2357_p5), %s221_s29, 4294934528  ;;  %v270_v0 = vld [vmem:[%s1751_s28] sm:$0xff]  ;;  %v271_v3 = vld [vmem:[%s1751_s28 + $0x8] sm:$0xff]  ;;  %s1770_s17 = scalar_lea.vmem [#allocation7], %s1747_s1  ;;  %s1788_s22 = scalar_lea.vmem [#allocation8], %s1747_s1 }
  0x75   : > { %v398_v1 = vld [vmem:[%s1759_s9] sm:$0xff]  ;;  %v399_v4 = vld [vmem:[%s1759_s9 + $0x8] sm:$0xff]  ;;  %v272_v7 = vld [vmem:[%s1751_s28 + $0x10] sm:$0xff]  ;;  %s1321_s4 = sshll.u32 %s1585_s16, 14  ;;  %s1180_s25 = sshll.u32 %s1788_s22, 4  ;;  %s2287_s25 = int_to_ptr.vmem [resolvable:$true] %s1180_s25 }
  0x76   : > { %v526_v2 = vmul.f32 0.5, %v398_v1  ;;  %v782_v5 = vld [vmem:[%s1770_s17] sm:$0xff]  ;;  %v527_v6 = vmul.f32 0.5, %v399_v4  ;;  %v400_v8 = vld [vmem:[%s1759_s9 + $0x10] sm:$0xff]  ;;  %v783_v10 = vld [vmem:[%s1770_s17 + $0x8] sm:$0xff]  ;;  %s2285_s30 = scalar_lea.hbm %s2336_s3, %s1321_s4  ;;  %s1167_s16 = scalar_lea.sflag [#allocation4], %s1744_s0 }
  0x77   : > { %v528_v11 = vmul.f32 0.5, %v400_v8  ;;  %v273_v12 = vld [vmem:[%s1751_s28 + $0x18] sm:$0xff]  ;;  %v784_v15 = vld [vmem:[%s1770_s17 + $0x10] sm:$0xff]  ;;  %v274_v17 = vld [vmem:[%s1751_s28 + $0x20] sm:$0xff]  ;;  %s1466_s6 = scalar_lea.vmem %s2287_s25, 16384  ;;  %p2358_p7 = scmp.ne.s32.totalorder %s2346_s23, 0 }
  0x78   : > { %v654_v9 = vadd.f32 %v526_v2, %v270_v0  ;;  %v401_v13 = vld [vmem:[%s1759_s9 + $0x18] sm:$0xff]  ;;  %v655_v14 = vadd.f32 %v527_v6, %v271_v3  ;;  %v402_v18 = vld [vmem:[%s1759_s9 + $0x20] sm:$0xff]  ;;  %v275_v23 = vld [vmem:[%s1751_s28 + $0x28] sm:$0xff]  ;;  %p1467_p13 = scmp.ne.s32.totalorder %s2287_s25, %s1466_s6  ;;  %s1541_s5 = smov [#allocation8]  }
  0x79   : > { %v529_v16 = vmul.f32 0.5, %v401_v13  ;;  %v656_v20 = vadd.f32 %v528_v11, %v272_v7  ;;  %v785_v21 = vld [vmem:[%s1770_s17 + $0x18] sm:$0xff]  ;;  %v530_v22 = vmul.f32 0.5, %v402_v18  ;;  %v403_v24 = vld [vmem:[%s1759_s9 + $0x28] sm:$0xff]  ;;  %v786_v27 = vld [vmem:[%s1770_s17 + $0x20] sm:$0xff]  ;;  %s1470_s26 = sshll.u32 %s1541_s5, 4  ;;  %s1471_s26 = int_to_ptr.vmem [resolvable:$false] %s1470_s26 }
  0x7a   : > { %v910_v19 = vadd.f32 %v782_v5, %v654_v9  ;;  %v911_v25 = vadd.f32 %v783_v10, %v655_v14  ;;  %v531_v28 = vmul.f32 0.5, %v403_v24  ;;  %v276_v29 = vld [vmem:[%s1751_s28 + $0x30] sm:$0xff]  ;;  %v787_v33 = vld [vmem:[%s1770_s17 + $0x28] sm:$0xff]  ;;  %v277_v35 = vld [vmem:[%s1751_s28 + $0x38] sm:$0xff]  ;;  %p1468_p8 = pnand %p1467_p13, %p2358_p7  ;;  %s1472_s27 = scalar_lea.vmem %s1471_s26, 32768 }
  0x7b   : > { %v657_v26 = vadd.f32 %v529_v16, %v273_v12  ;;  %v404_v30 = vld [vmem:[%s1759_s9 + $0x30] sm:$0xff]  ;;  %v912_v31 = vadd.f32 %v784_v15, %v656_v20  ;;  %v658_v32 = vadd.f32 %v530_v22, %v274_v17  ;;  %v405_v36 = vld [vmem:[%s1759_s9 + $0x38] sm:$0xff]  ;;  %v278_v41 = vld [vmem:[%s1751_s28 + $0x40] sm:$0xff]  ;;  %p1473_p1 = scmp.lt.s32.totalorder %s2287_s25, %s1471_s26  ;;  %p1474_p3 = scmp.lt.s32.totalorder %s1472_s27, %s1466_s6 }
  0x7c   : > { %1038 = vst [vmem:[%s1788_s22] sm:$0xff] %v910_v19  ;;  %v532_v34 = vmul.f32 0.5, %v404_v30  ;;  %1039 = vst [vmem:[%s1788_s22 + $0x8] sm:$0xff] %v911_v25  ;;  %v659_v38 = vadd.f32 %v531_v28, %v275_v23  ;;  %v788_v39 = vld [vmem:[%s1770_s17 + $0x30] sm:$0xff]  ;;  %v533_v40 = vmul.f32 0.5, %v405_v36  ;;  %v406_v42 = vld [vmem:[%s1759_s9 + $0x40] sm:$0xff]  ;;  %p1469_p10 = pneg %p1468_p8 }
  0x7d   : > { %v913_v37 = vadd.f32 %v785_v21, %v657_v26  ;;  %1040 = vst [vmem:[%s1788_s22 + $0x10] sm:$0xff] %v912_v31  ;;  %v914_v43 = vadd.f32 %v786_v27, %v658_v32  ;;  %v789_v45 = vld [vmem:[%s1770_s17 + $0x38] sm:$0xff]  ;;  %v534_v46 = vmul.f32 0.5, %v406_v42  ;;  %v279_v47 = vld [vmem:[%s1751_s28 + $0x48] sm:$0xff]  ;;  %v790_v51 = vld [vmem:[%s1770_s17 + $0x40] sm:$0xff]  ;;  %p1475_p9 = por %p1474_p3, %p1473_p1 }
  0x7e   : > { %v660_v44 = vadd.f32 %v532_v34, %v276_v29  ;;  %v407_v48 = vld [vmem:[%s1759_s9 + $0x48] sm:$0xff]  ;;  %v915_v49 = vadd.f32 %v787_v33, %v659_v38  ;;  %v661_v50 = vadd.f32 %v533_v40, %v277_v35  ;;  %v280_v53 = vld [vmem:[%s1751_s28 + $0x50] sm:$0xff]  ;;  %v281_v59 = vld [vmem:[%s1751_s28 + $0x58] sm:$0xff] }
  0x7f   : > { %1041 = vst [vmem:[%s1788_s22 + $0x18] sm:$0xff] %v913_v37  ;;  %v535_v52 = vmul.f32 0.5, %v407_v48  ;;  %v408_v54 = vld [vmem:[%s1759_s9 + $0x50] sm:$0xff]  ;;  %1042 = vst [vmem:[%s1788_s22 + $0x20] sm:$0xff] %v914_v43  ;;  %v662_v56 = vadd.f32 %v534_v46, %v278_v41  ;;  %v791_v57 = vld [vmem:[%s1770_s17 + $0x48] sm:$0xff]  ;;  %p1476_p6 = pnand %p1475_p9, %p1469_p10 }
  0x80   : > { %v916_v55 = vadd.f32 %v788_v39, %v660_v44  ;;  %v536_v58 = vmul.f32 0.5, %v408_v54  ;;  %v409_v60 = vld [vmem:[%s1759_s9 + $0x58] sm:$0xff]  ;;  %1043 = vst [vmem:[%s1788_s22 + $0x28] sm:$0xff] %v915_v49  ;;  %v917_v61 = vadd.f32 %v789_v45, %v661_v50  ;;  %v792_v63 = vld [vmem:[%s1770_s17 + $0x50] sm:$0xff]  ;;  %v282_v1 = vld [vmem:[%s1751_s28 + $0x60] sm:$0xff] }
  0x81   : > { %v663_v62 = vadd.f32 %v535_v52, %v279_v47  ;;  %v537_v0 = vmul.f32 0.5, %v409_v60  ;;  %v410_v2 = vld [vmem:[%s1759_s9 + $0x60] sm:$0xff]  ;;  %v918_v3 = vadd.f32 %v790_v51, %v662_v56  ;;  %v793_v5 = vld [vmem:[%s1770_s17 + $0x58] sm:$0xff]  ;;  %v283_v7 = vld [vmem:[%s1751_s28 + $0x68] sm:$0xff] }
  0x82   : > { %1044 = vst [vmem:[%s1788_s22 + $0x30] sm:$0xff] %v916_v55  ;;  %v664_v4 = vadd.f32 %v536_v58, %v280_v53  ;;  %v538_v6 = vmul.f32 0.5, %v410_v2  ;;  %v411_v8 = vld [vmem:[%s1759_s9 + $0x68] sm:$0xff]  ;;  %1045 = vst [vmem:[%s1788_s22 + $0x38] sm:$0xff] %v917_v61  ;;  %v794_v11 = vld [vmem:[%s1770_s17 + $0x60] sm:$0xff] }
  0x83   : > { %v919_v9 = vadd.f32 %v791_v57, %v663_v62  ;;  %v665_v10 = vadd.f32 %v537_v0, %v281_v59  ;;  %v539_v12 = vmul.f32 0.5, %v411_v8  ;;  %v284_v13 = vld [vmem:[%s1751_s28 + $0x70] sm:$0xff]  ;;  %1046 = vst [vmem:[%s1788_s22 + $0x40] sm:$0xff] %v918_v3  ;;  %v795_v17 = vld [vmem:[%s1770_s17 + $0x68] sm:$0xff]  ;;  %v285_v19 = vld [vmem:[%s1751_s28 + $0x78] sm:$0xff] }
  0x84   : > { %v412_v14 = vld [vmem:[%s1759_s9 + $0x70] sm:$0xff]  ;;  %v920_v15 = vadd.f32 %v792_v63, %v664_v4  ;;  %v666_v16 = vadd.f32 %v538_v6, %v282_v1  ;;  %v413_v20 = vld [vmem:[%s1759_s9 + $0x78] sm:$0xff]  ;;  %v286_v25 = vld [vmem:[%s1751_s28 + $0x80] sm:$0xff] }
  0x85   : > { %v540_v18 = vmul.f32 0.5, %v412_v14  ;;  %1047 = vst [vmem:[%s1788_s22 + $0x48] sm:$0xff] %v919_v9  ;;  %v921_v21 = vadd.f32 %v793_v5, %v665_v10  ;;  %v667_v22 = vadd.f32 %v539_v12, %v283_v7  ;;  %v796_v23 = vld [vmem:[%s1770_s17 + $0x70] sm:$0xff]  ;;  %v541_v24 = vmul.f32 0.5, %v413_v20  ;;  %v414_v26 = vld [vmem:[%s1759_s9 + $0x80] sm:$0xff]  ;;  %v797_v29 = vld [vmem:[%s1770_s17 + $0x78] sm:$0xff] }
  0x86   : > { %1048 = vst [vmem:[%s1788_s22 + $0x50] sm:$0xff] %v920_v15  ;;  %v922_v27 = vadd.f32 %v794_v11, %v666_v16  ;;  %v542_v30 = vmul.f32 0.5, %v414_v26  ;;  %v287_v31 = vld [vmem:[%s1751_s28 + $0x88] sm:$0xff]  ;;  %v798_v35 = vld [vmem:[%s1770_s17 + $0x80] sm:$0xff]  ;;  %v288_v37 = vld [vmem:[%s1751_s28 + $0x90] sm:$0xff] }
  0x87   : > { %v668_v28 = vadd.f32 %v540_v18, %v284_v13  ;;  %v415_v32 = vld [vmem:[%s1759_s9 + $0x88] sm:$0xff]  ;;  %1049 = vst [vmem:[%s1788_s22 + $0x58] sm:$0xff] %v921_v21  ;;  %v923_v33 = vadd.f32 %v795_v17, %v667_v22  ;;  %v669_v34 = vadd.f32 %v541_v24, %v285_v19  ;;  %v416_v38 = vld [vmem:[%s1759_s9 + $0x90] sm:$0xff]  ;;  %v289_v43 = vld [vmem:[%s1751_s28 + $0x98] sm:$0xff] }
  0x88   : > { %v543_v36 = vmul.f32 0.5, %v415_v32  ;;  %1050 = vst [vmem:[%s1788_s22 + $0x60] sm:$0xff] %v922_v27  ;;  %v670_v40 = vadd.f32 %v542_v30, %v286_v25  ;;  %v799_v41 = vld [vmem:[%s1770_s17 + $0x88] sm:$0xff]  ;;  %v544_v42 = vmul.f32 0.5, %v416_v38  ;;  %v417_v44 = vld [vmem:[%s1759_s9 + $0x98] sm:$0xff]  ;;  %v800_v47 = vld [vmem:[%s1770_s17 + $0x90] sm:$0xff] }
  0x89   : > { %v924_v39 = vadd.f32 %v796_v23, %v668_v28  ;;  %1051 = vst [vmem:[%s1788_s22 + $0x68] sm:$0xff] %v923_v33  ;;  %v925_v45 = vadd.f32 %v797_v29, %v669_v34  ;;  %v545_v48 = vmul.f32 0.5, %v417_v44  ;;  %v290_v49 = vld [vmem:[%s1751_s28 + $0xa0] sm:$0xff]  ;;  %v801_v53 = vld [vmem:[%s1770_s17 + $0x98] sm:$0xff]  ;;  %v291_v55 = vld [vmem:[%s1751_s28 + $0xa8] sm:$0xff] }
  0x8a   : > { %v671_v46 = vadd.f32 %v543_v36, %v287_v31  ;;  %v418_v50 = vld [vmem:[%s1759_s9 + $0xa0] sm:$0xff]  ;;  %v926_v51 = vadd.f32 %v798_v35, %v670_v40  ;;  %v672_v52 = vadd.f32 %v544_v42, %v288_v37  ;;  %v419_v56 = vld [vmem:[%s1759_s9 + $0xa8] sm:$0xff]  ;;  %v292_v61 = vld [vmem:[%s1751_s28 + $0xb0] sm:$0xff] }
  0x8b   : > { %1052 = vst [vmem:[%s1788_s22 + $0x70] sm:$0xff] %v924_v39  ;;  %v546_v54 = vmul.f32 0.5, %v418_v50  ;;  %1053 = vst [vmem:[%s1788_s22 + $0x78] sm:$0xff] %v925_v45  ;;  %v673_v58 = vadd.f32 %v545_v48, %v289_v43  ;;  %v802_v59 = vld [vmem:[%s1770_s17 + $0xa0] sm:$0xff]  ;;  %v547_v60 = vmul.f32 0.5, %v419_v56  ;;  %v420_v62 = vld [vmem:[%s1759_s9 + $0xb0] sm:$0xff] }
  0x8c   : > { %v927_v57 = vadd.f32 %v799_v41, %v671_v46  ;;  %1054 = vst [vmem:[%s1788_s22 + $0x80] sm:$0xff] %v926_v51  ;;  %v928_v63 = vadd.f32 %v800_v47, %v672_v52  ;;  %v803_v1 = vld [vmem:[%s1770_s17 + $0xa8] sm:$0xff]  ;;  %v548_v2 = vmul.f32 0.5, %v420_v62  ;;  %v293_v3 = vld [vmem:[%s1751_s28 + $0xb8] sm:$0xff]  ;;  %v804_v7 = vld [vmem:[%s1770_s17 + $0xb0] sm:$0xff] }
  0x8d   : > { %v674_v0 = vadd.f32 %v546_v54, %v290_v49  ;;  %v421_v4 = vld [vmem:[%s1759_s9 + $0xb8] sm:$0xff]  ;;  %v929_v5 = vadd.f32 %v801_v53, %v673_v58  ;;  %v675_v6 = vadd.f32 %v547_v60, %v291_v55  ;;  %v294_v9 = vld [vmem:[%s1751_s28 + $0xc0] sm:$0xff]  ;;  %v295_v15 = vld [vmem:[%s1751_s28 + $0xc8] sm:$0xff] }
  0x8e   : > { %1055 = vst [vmem:[%s1788_s22 + $0x88] sm:$0xff] %v927_v57  ;;  %v549_v8 = vmul.f32 0.5, %v421_v4  ;;  %v422_v10 = vld [vmem:[%s1759_s9 + $0xc0] sm:$0xff]  ;;  %1056 = vst [vmem:[%s1788_s22 + $0x90] sm:$0xff] %v928_v63  ;;  %v676_v12 = vadd.f32 %v548_v2, %v292_v61  ;;  %v805_v13 = vld [vmem:[%s1770_s17 + $0xb8] sm:$0xff] }
  0x8f   : > { %v930_v11 = vadd.f32 %v802_v59, %v674_v0  ;;  %v550_v14 = vmul.f32 0.5, %v422_v10  ;;  %v423_v16 = vld [vmem:[%s1759_s9 + $0xc8] sm:$0xff]  ;;  %1057 = vst [vmem:[%s1788_s22 + $0x98] sm:$0xff] %v929_v5  ;;  %v931_v17 = vadd.f32 %v803_v1, %v675_v6  ;;  %v806_v19 = vld [vmem:[%s1770_s17 + $0xc0] sm:$0xff]  ;;  %v296_v21 = vld [vmem:[%s1751_s28 + $0xd0] sm:$0xff] }
  0x90   : > { %v677_v18 = vadd.f32 %v549_v8, %v293_v3  ;;  %v551_v20 = vmul.f32 0.5, %v423_v16  ;;  %v424_v22 = vld [vmem:[%s1759_s9 + $0xd0] sm:$0xff]  ;;  %v932_v23 = vadd.f32 %v804_v7, %v676_v12  ;;  %v807_v25 = vld [vmem:[%s1770_s17 + $0xc8] sm:$0xff]  ;;  %v297_v27 = vld [vmem:[%s1751_s28 + $0xd8] sm:$0xff] }
  0x91   : > { %1058 = vst [vmem:[%s1788_s22 + $0xa0] sm:$0xff] %v930_v11  ;;  %v678_v24 = vadd.f32 %v550_v14, %v294_v9  ;;  %v552_v26 = vmul.f32 0.5, %v424_v22  ;;  %v425_v28 = vld [vmem:[%s1759_s9 + $0xd8] sm:$0xff]  ;;  %1059 = vst [vmem:[%s1788_s22 + $0xa8] sm:$0xff] %v931_v17  ;;  %v808_v31 = vld [vmem:[%s1770_s17 + $0xd0] sm:$0xff] }
  0x92   : > { %v933_v29 = vadd.f32 %v805_v13, %v677_v18  ;;  %v679_v30 = vadd.f32 %v551_v20, %v295_v15  ;;  %v553_v32 = vmul.f32 0.5, %v425_v28  ;;  %v298_v33 = vld [vmem:[%s1751_s28 + $0xe0] sm:$0xff]  ;;  %1060 = vst [vmem:[%s1788_s22 + $0xb0] sm:$0xff] %v932_v23  ;;  %v809_v37 = vld [vmem:[%s1770_s17 + $0xd8] sm:$0xff]  ;;  %v299_v39 = vld [vmem:[%s1751_s28 + $0xe8] sm:$0xff] }
  0x93   : > { %v426_v34 = vld [vmem:[%s1759_s9 + $0xe0] sm:$0xff]  ;;  %v934_v35 = vadd.f32 %v806_v19, %v678_v24  ;;  %v680_v36 = vadd.f32 %v552_v26, %v296_v21  ;;  %v427_v40 = vld [vmem:[%s1759_s9 + $0xe8] sm:$0xff]  ;;  %v300_v45 = vld [vmem:[%s1751_s28 + $0xf0] sm:$0xff] }
  0x94   : > { %v554_v38 = vmul.f32 0.5, %v426_v34  ;;  %1061 = vst [vmem:[%s1788_s22 + $0xb8] sm:$0xff] %v933_v29  ;;  %v935_v41 = vadd.f32 %v807_v25, %v679_v30  ;;  %v681_v42 = vadd.f32 %v553_v32, %v297_v27  ;;  %v810_v43 = vld [vmem:[%s1770_s17 + $0xe0] sm:$0xff]  ;;  %v555_v44 = vmul.f32 0.5, %v427_v40  ;;  %v428_v46 = vld [vmem:[%s1759_s9 + $0xf0] sm:$0xff]  ;;  %v811_v49 = vld [vmem:[%s1770_s17 + $0xe8] sm:$0xff] }
  0x95   : > { %1062 = vst [vmem:[%s1788_s22 + $0xc0] sm:$0xff] %v934_v35  ;;  %v936_v47 = vadd.f32 %v808_v31, %v680_v36  ;;  %v556_v50 = vmul.f32 0.5, %v428_v46  ;;  %v301_v51 = vld [vmem:[%s1751_s28 + $0xf8] sm:$0xff]  ;;  %v812_v55 = vld [vmem:[%s1770_s17 + $0xf0] sm:$0xff]  ;;  %v302_v57 = vld [vmem:[%s1751_s28 + $0x100] sm:$0xff] }
  0x96   : > { %v682_v48 = vadd.f32 %v554_v38, %v298_v33  ;;  %v429_v52 = vld [vmem:[%s1759_s9 + $0xf8] sm:$0xff]  ;;  %1063 = vst [vmem:[%s1788_s22 + $0xc8] sm:$0xff] %v935_v41  ;;  %v937_v53 = vadd.f32 %v809_v37, %v681_v42  ;;  %v683_v54 = vadd.f32 %v555_v44, %v299_v39  ;;  %v430_v58 = vld [vmem:[%s1759_s9 + $0x100] sm:$0xff]  ;;  %v303_v63 = vld [vmem:[%s1751_s28 + $0x108] sm:$0xff] }
  0x97   : > { %v557_v56 = vmul.f32 0.5, %v429_v52  ;;  %1064 = vst [vmem:[%s1788_s22 + $0xd0] sm:$0xff] %v936_v47  ;;  %v684_v60 = vadd.f32 %v556_v50, %v300_v45  ;;  %v813_v61 = vld [vmem:[%s1770_s17 + $0xf8] sm:$0xff]  ;;  %v558_v62 = vmul.f32 0.5, %v430_v58  ;;  %v431_v0 = vld [vmem:[%s1759_s9 + $0x108] sm:$0xff]  ;;  %v814_v3 = vld [vmem:[%s1770_s17 + $0x100] sm:$0xff] }
  0x98   : > { %v938_v59 = vadd.f32 %v810_v43, %v682_v48  ;;  %1065 = vst [vmem:[%s1788_s22 + $0xd8] sm:$0xff] %v937_v53  ;;  %v939_v1 = vadd.f32 %v811_v49, %v683_v54  ;;  %v559_v4 = vmul.f32 0.5, %v431_v0  ;;  %v304_v5 = vld [vmem:[%s1751_s28 + $0x110] sm:$0xff]  ;;  %v815_v9 = vld [vmem:[%s1770_s17 + $0x108] sm:$0xff]  ;;  %v305_v11 = vld [vmem:[%s1751_s28 + $0x118] sm:$0xff] }
  0x99   : > { %v685_v2 = vadd.f32 %v557_v56, %v301_v51  ;;  %v432_v6 = vld [vmem:[%s1759_s9 + $0x110] sm:$0xff]  ;;  %v940_v7 = vadd.f32 %v812_v55, %v684_v60  ;;  %v686_v8 = vadd.f32 %v558_v62, %v302_v57  ;;  %v433_v12 = vld [vmem:[%s1759_s9 + $0x118] sm:$0xff]  ;;  %v306_v17 = vld [vmem:[%s1751_s28 + $0x120] sm:$0xff] }
  0x9a   : > { %1066 = vst [vmem:[%s1788_s22 + $0xe0] sm:$0xff] %v938_v59  ;;  %v560_v10 = vmul.f32 0.5, %v432_v6  ;;  %1067 = vst [vmem:[%s1788_s22 + $0xe8] sm:$0xff] %v939_v1  ;;  %v687_v14 = vadd.f32 %v559_v4, %v303_v63  ;;  %v816_v15 = vld [vmem:[%s1770_s17 + $0x110] sm:$0xff]  ;;  %v561_v16 = vmul.f32 0.5, %v433_v12  ;;  %v434_v18 = vld [vmem:[%s1759_s9 + $0x120] sm:$0xff] }
  0x9b   : > { %v941_v13 = vadd.f32 %v813_v61, %v685_v2  ;;  %1068 = vst [vmem:[%s1788_s22 + $0xf0] sm:$0xff] %v940_v7  ;;  %v942_v19 = vadd.f32 %v814_v3, %v686_v8  ;;  %v817_v21 = vld [vmem:[%s1770_s17 + $0x118] sm:$0xff]  ;;  %v562_v22 = vmul.f32 0.5, %v434_v18  ;;  %v307_v23 = vld [vmem:[%s1751_s28 + $0x128] sm:$0xff]  ;;  %v818_v27 = vld [vmem:[%s1770_s17 + $0x120] sm:$0xff] }
  0x9c   : > { %v688_v20 = vadd.f32 %v560_v10, %v304_v5  ;;  %v435_v24 = vld [vmem:[%s1759_s9 + $0x128] sm:$0xff]  ;;  %v943_v25 = vadd.f32 %v815_v9, %v687_v14  ;;  %v689_v26 = vadd.f32 %v561_v16, %v305_v11  ;;  %v308_v29 = vld [vmem:[%s1751_s28 + $0x130] sm:$0xff]  ;;  %v309_v35 = vld [vmem:[%s1751_s28 + $0x138] sm:$0xff] }
  0x9d   : > { %1069 = vst [vmem:[%s1788_s22 + $0xf8] sm:$0xff] %v941_v13  ;;  %v563_v28 = vmul.f32 0.5, %v435_v24  ;;  %v436_v30 = vld [vmem:[%s1759_s9 + $0x130] sm:$0xff]  ;;  %1070 = vst [vmem:[%s1788_s22 + $0x100] sm:$0xff] %v942_v19  ;;  %v690_v32 = vadd.f32 %v562_v22, %v306_v17  ;;  %v819_v33 = vld [vmem:[%s1770_s17 + $0x128] sm:$0xff] }
  0x9e   : > { %v944_v31 = vadd.f32 %v816_v15, %v688_v20  ;;  %v564_v34 = vmul.f32 0.5, %v436_v30  ;;  %v437_v36 = vld [vmem:[%s1759_s9 + $0x138] sm:$0xff]  ;;  %1071 = vst [vmem:[%s1788_s22 + $0x108] sm:$0xff] %v943_v25  ;;  %v945_v37 = vadd.f32 %v817_v21, %v689_v26  ;;  %v820_v39 = vld [vmem:[%s1770_s17 + $0x130] sm:$0xff]  ;;  %v310_v41 = vld [vmem:[%s1751_s28 + $0x140] sm:$0xff] }
  0x9f   : > { %v691_v38 = vadd.f32 %v563_v28, %v307_v23  ;;  %v565_v40 = vmul.f32 0.5, %v437_v36  ;;  %v438_v42 = vld [vmem:[%s1759_s9 + $0x140] sm:$0xff]  ;;  %v946_v43 = vadd.f32 %v818_v27, %v690_v32  ;;  %v821_v45 = vld [vmem:[%s1770_s17 + $0x138] sm:$0xff]  ;;  %v311_v47 = vld [vmem:[%s1751_s28 + $0x148] sm:$0xff] }
  0xa0   : > { %1072 = vst [vmem:[%s1788_s22 + $0x110] sm:$0xff] %v944_v31  ;;  %v692_v44 = vadd.f32 %v564_v34, %v308_v29  ;;  %v566_v46 = vmul.f32 0.5, %v438_v42  ;;  %v439_v48 = vld [vmem:[%s1759_s9 + $0x148] sm:$0xff]  ;;  %1073 = vst [vmem:[%s1788_s22 + $0x118] sm:$0xff] %v945_v37  ;;  %v822_v51 = vld [vmem:[%s1770_s17 + $0x140] sm:$0xff] }
  0xa1   : > { %v947_v49 = vadd.f32 %v819_v33, %v691_v38  ;;  %v693_v50 = vadd.f32 %v565_v40, %v309_v35  ;;  %v567_v52 = vmul.f32 0.5, %v439_v48  ;;  %v312_v53 = vld [vmem:[%s1751_s28 + $0x150] sm:$0xff]  ;;  %1074 = vst [vmem:[%s1788_s22 + $0x120] sm:$0xff] %v946_v43  ;;  %v823_v57 = vld [vmem:[%s1770_s17 + $0x148] sm:$0xff]  ;;  %v313_v59 = vld [vmem:[%s1751_s28 + $0x158] sm:$0xff] }
  0xa2   : > { %v440_v54 = vld [vmem:[%s1759_s9 + $0x150] sm:$0xff]  ;;  %v948_v55 = vadd.f32 %v820_v39, %v692_v44  ;;  %v694_v56 = vadd.f32 %v566_v46, %v310_v41  ;;  %v441_v60 = vld [vmem:[%s1759_s9 + $0x158] sm:$0xff]  ;;  %v314_v1 = vld [vmem:[%s1751_s28 + $0x160] sm:$0xff] }
  0xa3   : > { %v568_v58 = vmul.f32 0.5, %v440_v54  ;;  %1075 = vst [vmem:[%s1788_s22 + $0x128] sm:$0xff] %v947_v49  ;;  %v949_v61 = vadd.f32 %v821_v45, %v693_v50  ;;  %v695_v62 = vadd.f32 %v567_v52, %v311_v47  ;;  %v824_v63 = vld [vmem:[%s1770_s17 + $0x150] sm:$0xff]  ;;  %v569_v0 = vmul.f32 0.5, %v441_v60  ;;  %v442_v2 = vld [vmem:[%s1759_s9 + $0x160] sm:$0xff]  ;;  %v825_v5 = vld [vmem:[%s1770_s17 + $0x158] sm:$0xff] }
  0xa4   : > { %1076 = vst [vmem:[%s1788_s22 + $0x130] sm:$0xff] %v948_v55  ;;  %v950_v3 = vadd.f32 %v822_v51, %v694_v56  ;;  %v570_v6 = vmul.f32 0.5, %v442_v2  ;;  %v315_v7 = vld [vmem:[%s1751_s28 + $0x168] sm:$0xff]  ;;  %v826_v11 = vld [vmem:[%s1770_s17 + $0x160] sm:$0xff]  ;;  %v316_v13 = vld [vmem:[%s1751_s28 + $0x170] sm:$0xff] }
  0xa5   : > { %v696_v4 = vadd.f32 %v568_v58, %v312_v53  ;;  %v443_v8 = vld [vmem:[%s1759_s9 + $0x168] sm:$0xff]  ;;  %1077 = vst [vmem:[%s1788_s22 + $0x138] sm:$0xff] %v949_v61  ;;  %v951_v9 = vadd.f32 %v823_v57, %v695_v62  ;;  %v697_v10 = vadd.f32 %v569_v0, %v313_v59  ;;  %v444_v14 = vld [vmem:[%s1759_s9 + $0x170] sm:$0xff]  ;;  %v317_v19 = vld [vmem:[%s1751_s28 + $0x178] sm:$0xff] }
  0xa6   : > { %v571_v12 = vmul.f32 0.5, %v443_v8  ;;  %1078 = vst [vmem:[%s1788_s22 + $0x140] sm:$0xff] %v950_v3  ;;  %v698_v16 = vadd.f32 %v570_v6, %v314_v1  ;;  %v827_v17 = vld [vmem:[%s1770_s17 + $0x168] sm:$0xff]  ;;  %v572_v18 = vmul.f32 0.5, %v444_v14  ;;  %v445_v20 = vld [vmem:[%s1759_s9 + $0x178] sm:$0xff]  ;;  %v828_v23 = vld [vmem:[%s1770_s17 + $0x170] sm:$0xff] }
  0xa7   : > { %v952_v15 = vadd.f32 %v824_v63, %v696_v4  ;;  %1079 = vst [vmem:[%s1788_s22 + $0x148] sm:$0xff] %v951_v9  ;;  %v953_v21 = vadd.f32 %v825_v5, %v697_v10  ;;  %v573_v24 = vmul.f32 0.5, %v445_v20  ;;  %v318_v25 = vld [vmem:[%s1751_s28 + $0x180] sm:$0xff]  ;;  %v829_v29 = vld [vmem:[%s1770_s17 + $0x178] sm:$0xff]  ;;  %v319_v31 = vld [vmem:[%s1751_s28 + $0x188] sm:$0xff] }
  0xa8   : > { %v699_v22 = vadd.f32 %v571_v12, %v315_v7  ;;  %v446_v26 = vld [vmem:[%s1759_s9 + $0x180] sm:$0xff]  ;;  %v954_v27 = vadd.f32 %v826_v11, %v698_v16  ;;  %v700_v28 = vadd.f32 %v572_v18, %v316_v13  ;;  %v447_v32 = vld [vmem:[%s1759_s9 + $0x188] sm:$0xff]  ;;  %v320_v37 = vld [vmem:[%s1751_s28 + $0x190] sm:$0xff] }
  0xa9   : > { %1080 = vst [vmem:[%s1788_s22 + $0x150] sm:$0xff] %v952_v15  ;;  %v574_v30 = vmul.f32 0.5, %v446_v26  ;;  %1081 = vst [vmem:[%s1788_s22 + $0x158] sm:$0xff] %v953_v21  ;;  %v701_v34 = vadd.f32 %v573_v24, %v317_v19  ;;  %v830_v35 = vld [vmem:[%s1770_s17 + $0x180] sm:$0xff]  ;;  %v575_v36 = vmul.f32 0.5, %v447_v32  ;;  %v448_v38 = vld [vmem:[%s1759_s9 + $0x190] sm:$0xff] }
  0xaa   : > { %v955_v33 = vadd.f32 %v827_v17, %v699_v22  ;;  %1082 = vst [vmem:[%s1788_s22 + $0x160] sm:$0xff] %v954_v27  ;;  %v956_v39 = vadd.f32 %v828_v23, %v700_v28  ;;  %v831_v41 = vld [vmem:[%s1770_s17 + $0x188] sm:$0xff]  ;;  %v576_v42 = vmul.f32 0.5, %v448_v38  ;;  %v321_v43 = vld [vmem:[%s1751_s28 + $0x198] sm:$0xff]  ;;  %v832_v47 = vld [vmem:[%s1770_s17 + $0x190] sm:$0xff] }
  0xab   : > { %v702_v40 = vadd.f32 %v574_v30, %v318_v25  ;;  %v449_v44 = vld [vmem:[%s1759_s9 + $0x198] sm:$0xff]  ;;  %v957_v45 = vadd.f32 %v829_v29, %v701_v34  ;;  %v703_v46 = vadd.f32 %v575_v36, %v319_v31  ;;  %v322_v49 = vld [vmem:[%s1751_s28 + $0x1a0] sm:$0xff]  ;;  %v323_v55 = vld [vmem:[%s1751_s28 + $0x1a8] sm:$0xff] }
  0xac   : > { %1083 = vst [vmem:[%s1788_s22 + $0x168] sm:$0xff] %v955_v33  ;;  %v577_v48 = vmul.f32 0.5, %v449_v44  ;;  %v450_v50 = vld [vmem:[%s1759_s9 + $0x1a0] sm:$0xff]  ;;  %1084 = vst [vmem:[%s1788_s22 + $0x170] sm:$0xff] %v956_v39  ;;  %v704_v52 = vadd.f32 %v576_v42, %v320_v37  ;;  %v833_v53 = vld [vmem:[%s1770_s17 + $0x198] sm:$0xff] }
  0xad   : > { %v958_v51 = vadd.f32 %v830_v35, %v702_v40  ;;  %v578_v54 = vmul.f32 0.5, %v450_v50  ;;  %v451_v56 = vld [vmem:[%s1759_s9 + $0x1a8] sm:$0xff]  ;;  %1085 = vst [vmem:[%s1788_s22 + $0x178] sm:$0xff] %v957_v45  ;;  %v959_v57 = vadd.f32 %v831_v41, %v703_v46  ;;  %v834_v59 = vld [vmem:[%s1770_s17 + $0x1a0] sm:$0xff]  ;;  %v324_v61 = vld [vmem:[%s1751_s28 + $0x1b0] sm:$0xff] }
  0xae   : > { %v705_v58 = vadd.f32 %v577_v48, %v321_v43  ;;  %v579_v60 = vmul.f32 0.5, %v451_v56  ;;  %v452_v62 = vld [vmem:[%s1759_s9 + $0x1b0] sm:$0xff]  ;;  %v960_v63 = vadd.f32 %v832_v47, %v704_v52  ;;  %v835_v1 = vld [vmem:[%s1770_s17 + $0x1a8] sm:$0xff]  ;;  %v325_v3 = vld [vmem:[%s1751_s28 + $0x1b8] sm:$0xff] }
  0xaf   : > { %1086 = vst [vmem:[%s1788_s22 + $0x180] sm:$0xff] %v958_v51  ;;  %v706_v0 = vadd.f32 %v578_v54, %v322_v49  ;;  %v580_v2 = vmul.f32 0.5, %v452_v62  ;;  %v453_v4 = vld [vmem:[%s1759_s9 + $0x1b8] sm:$0xff]  ;;  %1087 = vst [vmem:[%s1788_s22 + $0x188] sm:$0xff] %v959_v57  ;;  %v836_v7 = vld [vmem:[%s1770_s17 + $0x1b0] sm:$0xff] }
  0xb0   : > { %v961_v5 = vadd.f32 %v833_v53, %v705_v58  ;;  %v707_v6 = vadd.f32 %v579_v60, %v323_v55  ;;  %v581_v8 = vmul.f32 0.5, %v453_v4  ;;  %v326_v9 = vld [vmem:[%s1751_s28 + $0x1c0] sm:$0xff]  ;;  %1088 = vst [vmem:[%s1788_s22 + $0x190] sm:$0xff] %v960_v63  ;;  %v837_v13 = vld [vmem:[%s1770_s17 + $0x1b8] sm:$0xff]  ;;  %v327_v15 = vld [vmem:[%s1751_s28 + $0x1c8] sm:$0xff] }
  0xb1   : > { %v454_v10 = vld [vmem:[%s1759_s9 + $0x1c0] sm:$0xff]  ;;  %v962_v11 = vadd.f32 %v834_v59, %v706_v0  ;;  %v708_v12 = vadd.f32 %v580_v2, %v324_v61  ;;  %v455_v16 = vld [vmem:[%s1759_s9 + $0x1c8] sm:$0xff]  ;;  %v328_v21 = vld [vmem:[%s1751_s28 + $0x1d0] sm:$0xff] }
  0xb2   : > { %v582_v14 = vmul.f32 0.5, %v454_v10  ;;  %1089 = vst [vmem:[%s1788_s22 + $0x198] sm:$0xff] %v961_v5  ;;  %v963_v17 = vadd.f32 %v835_v1, %v707_v6  ;;  %v709_v18 = vadd.f32 %v581_v8, %v325_v3  ;;  %v838_v19 = vld [vmem:[%s1770_s17 + $0x1c0] sm:$0xff]  ;;  %v583_v20 = vmul.f32 0.5, %v455_v16  ;;  %v456_v22 = vld [vmem:[%s1759_s9 + $0x1d0] sm:$0xff]  ;;  %v839_v25 = vld [vmem:[%s1770_s17 + $0x1c8] sm:$0xff] }
  0xb3   : > { %1090 = vst [vmem:[%s1788_s22 + $0x1a0] sm:$0xff] %v962_v11  ;;  %v964_v23 = vadd.f32 %v836_v7, %v708_v12  ;;  %v584_v26 = vmul.f32 0.5, %v456_v22  ;;  %v329_v27 = vld [vmem:[%s1751_s28 + $0x1d8] sm:$0xff]  ;;  %v840_v31 = vld [vmem:[%s1770_s17 + $0x1d0] sm:$0xff]  ;;  %v330_v33 = vld [vmem:[%s1751_s28 + $0x1e0] sm:$0xff] }
  0xb4   : > { %v710_v24 = vadd.f32 %v582_v14, %v326_v9  ;;  %v457_v28 = vld [vmem:[%s1759_s9 + $0x1d8] sm:$0xff]  ;;  %1091 = vst [vmem:[%s1788_s22 + $0x1a8] sm:$0xff] %v963_v17  ;;  %v965_v29 = vadd.f32 %v837_v13, %v709_v18  ;;  %v711_v30 = vadd.f32 %v583_v20, %v327_v15  ;;  %v458_v34 = vld [vmem:[%s1759_s9 + $0x1e0] sm:$0xff]  ;;  %v331_v39 = vld [vmem:[%s1751_s28 + $0x1e8] sm:$0xff] }
  0xb5   : > { %v585_v32 = vmul.f32 0.5, %v457_v28  ;;  %1092 = vst [vmem:[%s1788_s22 + $0x1b0] sm:$0xff] %v964_v23  ;;  %v712_v36 = vadd.f32 %v584_v26, %v328_v21  ;;  %v841_v37 = vld [vmem:[%s1770_s17 + $0x1d8] sm:$0xff]  ;;  %v586_v38 = vmul.f32 0.5, %v458_v34  ;;  %v459_v40 = vld [vmem:[%s1759_s9 + $0x1e8] sm:$0xff]  ;;  %v842_v43 = vld [vmem:[%s1770_s17 + $0x1e0] sm:$0xff] }
  0xb6   : > { %v966_v35 = vadd.f32 %v838_v19, %v710_v24  ;;  %1093 = vst [vmem:[%s1788_s22 + $0x1b8] sm:$0xff] %v965_v29  ;;  %v967_v41 = vadd.f32 %v839_v25, %v711_v30  ;;  %v587_v44 = vmul.f32 0.5, %v459_v40  ;;  %v332_v45 = vld [vmem:[%s1751_s28 + $0x1f0] sm:$0xff]  ;;  %v843_v49 = vld [vmem:[%s1770_s17 + $0x1e8] sm:$0xff]  ;;  %v333_v51 = vld [vmem:[%s1751_s28 + $0x1f8] sm:$0xff] }
  0xb7   : > { %v713_v42 = vadd.f32 %v585_v32, %v329_v27  ;;  %v460_v46 = vld [vmem:[%s1759_s9 + $0x1f0] sm:$0xff]  ;;  %v968_v47 = vadd.f32 %v840_v31, %v712_v36  ;;  %v714_v48 = vadd.f32 %v586_v38, %v330_v33  ;;  %v461_v52 = vld [vmem:[%s1759_s9 + $0x1f8] sm:$0xff]  ;;  %v334_v57 = vld [vmem:[%s1751_s28 + $0x200] sm:$0xff] }
  0xb8   : > { %1094 = vst [vmem:[%s1788_s22 + $0x1c0] sm:$0xff] %v966_v35  ;;  %v588_v50 = vmul.f32 0.5, %v460_v46  ;;  %1095 = vst [vmem:[%s1788_s22 + $0x1c8] sm:$0xff] %v967_v41  ;;  %v715_v54 = vadd.f32 %v587_v44, %v331_v39  ;;  %v844_v55 = vld [vmem:[%s1770_s17 + $0x1f0] sm:$0xff]  ;;  %v589_v56 = vmul.f32 0.5, %v461_v52  ;;  %v462_v58 = vld [vmem:[%s1759_s9 + $0x200] sm:$0xff] }
  0xb9   : > { %v969_v53 = vadd.f32 %v841_v37, %v713_v42  ;;  %1096 = vst [vmem:[%s1788_s22 + $0x1d0] sm:$0xff] %v968_v47  ;;  %v970_v59 = vadd.f32 %v842_v43, %v714_v48  ;;  %v845_v61 = vld [vmem:[%s1770_s17 + $0x1f8] sm:$0xff]  ;;  %v590_v62 = vmul.f32 0.5, %v462_v58  ;;  %v335_v63 = vld [vmem:[%s1751_s28 + $0x208] sm:$0xff]  ;;  %v846_v3 = vld [vmem:[%s1770_s17 + $0x200] sm:$0xff] }
  0xba   : > { %v716_v60 = vadd.f32 %v588_v50, %v332_v45  ;;  %v463_v0 = vld [vmem:[%s1759_s9 + $0x208] sm:$0xff]  ;;  %v971_v1 = vadd.f32 %v843_v49, %v715_v54  ;;  %v717_v2 = vadd.f32 %v589_v56, %v333_v51  ;;  %v336_v5 = vld [vmem:[%s1751_s28 + $0x210] sm:$0xff]  ;;  %v337_v11 = vld [vmem:[%s1751_s28 + $0x218] sm:$0xff] }
  0xbb   : > { %1097 = vst [vmem:[%s1788_s22 + $0x1d8] sm:$0xff] %v969_v53  ;;  %v591_v4 = vmul.f32 0.5, %v463_v0  ;;  %v464_v6 = vld [vmem:[%s1759_s9 + $0x210] sm:$0xff]  ;;  %1098 = vst [vmem:[%s1788_s22 + $0x1e0] sm:$0xff] %v970_v59  ;;  %v718_v8 = vadd.f32 %v590_v62, %v334_v57  ;;  %v847_v9 = vld [vmem:[%s1770_s17 + $0x208] sm:$0xff] }
  0xbc   : > { %v972_v7 = vadd.f32 %v844_v55, %v716_v60  ;;  %v592_v10 = vmul.f32 0.5, %v464_v6  ;;  %v465_v12 = vld [vmem:[%s1759_s9 + $0x218] sm:$0xff]  ;;  %1099 = vst [vmem:[%s1788_s22 + $0x1e8] sm:$0xff] %v971_v1  ;;  %v973_v13 = vadd.f32 %v845_v61, %v717_v2  ;;  %v848_v15 = vld [vmem:[%s1770_s17 + $0x210] sm:$0xff]  ;;  %v338_v17 = vld [vmem:[%s1751_s28 + $0x220] sm:$0xff] }
  0xbd   : > { %v719_v14 = vadd.f32 %v591_v4, %v335_v63  ;;  %v593_v16 = vmul.f32 0.5, %v465_v12  ;;  %v466_v18 = vld [vmem:[%s1759_s9 + $0x220] sm:$0xff]  ;;  %v974_v19 = vadd.f32 %v846_v3, %v718_v8  ;;  %v849_v21 = vld [vmem:[%s1770_s17 + $0x218] sm:$0xff]  ;;  %v339_v23 = vld [vmem:[%s1751_s28 + $0x228] sm:$0xff] }
  0xbe   : > { %1100 = vst [vmem:[%s1788_s22 + $0x1f0] sm:$0xff] %v972_v7  ;;  %v720_v20 = vadd.f32 %v592_v10, %v336_v5  ;;  %v594_v22 = vmul.f32 0.5, %v466_v18  ;;  %v467_v24 = vld [vmem:[%s1759_s9 + $0x228] sm:$0xff]  ;;  %1101 = vst [vmem:[%s1788_s22 + $0x1f8] sm:$0xff] %v973_v13  ;;  %v850_v27 = vld [vmem:[%s1770_s17 + $0x220] sm:$0xff] }
  0xbf   : > { %v975_v25 = vadd.f32 %v847_v9, %v719_v14  ;;  %v721_v26 = vadd.f32 %v593_v16, %v337_v11  ;;  %v595_v28 = vmul.f32 0.5, %v467_v24  ;;  %v340_v29 = vld [vmem:[%s1751_s28 + $0x230] sm:$0xff]  ;;  %1102 = vst [vmem:[%s1788_s22 + $0x200] sm:$0xff] %v974_v19  ;;  %v851_v33 = vld [vmem:[%s1770_s17 + $0x228] sm:$0xff]  ;;  %v341_v35 = vld [vmem:[%s1751_s28 + $0x238] sm:$0xff] }
  0xc0   : > { %v468_v30 = vld [vmem:[%s1759_s9 + $0x230] sm:$0xff]  ;;  %v976_v31 = vadd.f32 %v848_v15, %v720_v20  ;;  %v722_v32 = vadd.f32 %v594_v22, %v338_v17  ;;  %v469_v36 = vld [vmem:[%s1759_s9 + $0x238] sm:$0xff]  ;;  %v342_v41 = vld [vmem:[%s1751_s28 + $0x240] sm:$0xff] }
  0xc1   : > { %v596_v34 = vmul.f32 0.5, %v468_v30  ;;  %1103 = vst [vmem:[%s1788_s22 + $0x208] sm:$0xff] %v975_v25  ;;  %v977_v37 = vadd.f32 %v849_v21, %v721_v26  ;;  %v723_v38 = vadd.f32 %v595_v28, %v339_v23  ;;  %v852_v39 = vld [vmem:[%s1770_s17 + $0x230] sm:$0xff]  ;;  %v597_v40 = vmul.f32 0.5, %v469_v36  ;;  %v470_v42 = vld [vmem:[%s1759_s9 + $0x240] sm:$0xff]  ;;  %v853_v45 = vld [vmem:[%s1770_s17 + $0x238] sm:$0xff] }
  0xc2   : > { %1104 = vst [vmem:[%s1788_s22 + $0x210] sm:$0xff] %v976_v31  ;;  %v978_v43 = vadd.f32 %v850_v27, %v722_v32  ;;  %v598_v46 = vmul.f32 0.5, %v470_v42  ;;  %v343_v47 = vld [vmem:[%s1751_s28 + $0x248] sm:$0xff]  ;;  %v854_v51 = vld [vmem:[%s1770_s17 + $0x240] sm:$0xff]  ;;  %v344_v53 = vld [vmem:[%s1751_s28 + $0x250] sm:$0xff] }
  0xc3   : > { %v724_v44 = vadd.f32 %v596_v34, %v340_v29  ;;  %v471_v48 = vld [vmem:[%s1759_s9 + $0x248] sm:$0xff]  ;;  %1105 = vst [vmem:[%s1788_s22 + $0x218] sm:$0xff] %v977_v37  ;;  %v979_v49 = vadd.f32 %v851_v33, %v723_v38  ;;  %v725_v50 = vadd.f32 %v597_v40, %v341_v35  ;;  %v472_v54 = vld [vmem:[%s1759_s9 + $0x250] sm:$0xff]  ;;  %v345_v59 = vld [vmem:[%s1751_s28 + $0x258] sm:$0xff] }
  0xc4   : > { %v599_v52 = vmul.f32 0.5, %v471_v48  ;;  %1106 = vst [vmem:[%s1788_s22 + $0x220] sm:$0xff] %v978_v43  ;;  %v726_v56 = vadd.f32 %v598_v46, %v342_v41  ;;  %v855_v57 = vld [vmem:[%s1770_s17 + $0x248] sm:$0xff]  ;;  %v600_v58 = vmul.f32 0.5, %v472_v54  ;;  %v473_v60 = vld [vmem:[%s1759_s9 + $0x258] sm:$0xff]  ;;  %v856_v63 = vld [vmem:[%s1770_s17 + $0x250] sm:$0xff] }
  0xc5   : > { %v980_v55 = vadd.f32 %v852_v39, %v724_v44  ;;  %1107 = vst [vmem:[%s1788_s22 + $0x228] sm:$0xff] %v979_v49  ;;  %v981_v61 = vadd.f32 %v853_v45, %v725_v50  ;;  %v601_v0 = vmul.f32 0.5, %v473_v60  ;;  %v346_v1 = vld [vmem:[%s1751_s28 + $0x260] sm:$0xff]  ;;  %v857_v5 = vld [vmem:[%s1770_s17 + $0x258] sm:$0xff]  ;;  %v347_v7 = vld [vmem:[%s1751_s28 + $0x268] sm:$0xff] }
  0xc6   : > { %v727_v62 = vadd.f32 %v599_v52, %v343_v47  ;;  %v474_v2 = vld [vmem:[%s1759_s9 + $0x260] sm:$0xff]  ;;  %v982_v3 = vadd.f32 %v854_v51, %v726_v56  ;;  %v728_v4 = vadd.f32 %v600_v58, %v344_v53  ;;  %v475_v8 = vld [vmem:[%s1759_s9 + $0x268] sm:$0xff]  ;;  %v348_v13 = vld [vmem:[%s1751_s28 + $0x270] sm:$0xff] }
  0xc7   : > { %1108 = vst [vmem:[%s1788_s22 + $0x230] sm:$0xff] %v980_v55  ;;  %v602_v6 = vmul.f32 0.5, %v474_v2  ;;  %1109 = vst [vmem:[%s1788_s22 + $0x238] sm:$0xff] %v981_v61  ;;  %v729_v10 = vadd.f32 %v601_v0, %v345_v59  ;;  %v858_v11 = vld [vmem:[%s1770_s17 + $0x260] sm:$0xff]  ;;  %v603_v12 = vmul.f32 0.5, %v475_v8  ;;  %v476_v14 = vld [vmem:[%s1759_s9 + $0x270] sm:$0xff] }
  0xc8   : > { %v983_v9 = vadd.f32 %v855_v57, %v727_v62  ;;  %1110 = vst [vmem:[%s1788_s22 + $0x240] sm:$0xff] %v982_v3  ;;  %v984_v15 = vadd.f32 %v856_v63, %v728_v4  ;;  %v859_v17 = vld [vmem:[%s1770_s17 + $0x268] sm:$0xff]  ;;  %v604_v18 = vmul.f32 0.5, %v476_v14  ;;  %v349_v19 = vld [vmem:[%s1751_s28 + $0x278] sm:$0xff]  ;;  %v860_v23 = vld [vmem:[%s1770_s17 + $0x270] sm:$0xff] }
  0xc9   : > { %v730_v16 = vadd.f32 %v602_v6, %v346_v1  ;;  %v477_v20 = vld [vmem:[%s1759_s9 + $0x278] sm:$0xff]  ;;  %v985_v21 = vadd.f32 %v857_v5, %v729_v10  ;;  %v731_v22 = vadd.f32 %v603_v12, %v347_v7  ;;  %v350_v25 = vld [vmem:[%s1751_s28 + $0x280] sm:$0xff]  ;;  %v351_v31 = vld [vmem:[%s1751_s28 + $0x288] sm:$0xff] }
  0xca   : > { %1111 = vst [vmem:[%s1788_s22 + $0x248] sm:$0xff] %v983_v9  ;;  %v605_v24 = vmul.f32 0.5, %v477_v20  ;;  %v478_v26 = vld [vmem:[%s1759_s9 + $0x280] sm:$0xff]  ;;  %1112 = vst [vmem:[%s1788_s22 + $0x250] sm:$0xff] %v984_v15  ;;  %v732_v28 = vadd.f32 %v604_v18, %v348_v13  ;;  %v861_v29 = vld [vmem:[%s1770_s17 + $0x278] sm:$0xff] }
  0xcb   : > { %v986_v27 = vadd.f32 %v858_v11, %v730_v16  ;;  %v606_v30 = vmul.f32 0.5, %v478_v26  ;;  %v479_v32 = vld [vmem:[%s1759_s9 + $0x288] sm:$0xff]  ;;  %1113 = vst [vmem:[%s1788_s22 + $0x258] sm:$0xff] %v985_v21  ;;  %v987_v33 = vadd.f32 %v859_v17, %v731_v22  ;;  %v862_v35 = vld [vmem:[%s1770_s17 + $0x280] sm:$0xff]  ;;  %v352_v37 = vld [vmem:[%s1751_s28 + $0x290] sm:$0xff] }
  0xcc   : > { %v733_v34 = vadd.f32 %v605_v24, %v349_v19  ;;  %v607_v36 = vmul.f32 0.5, %v479_v32  ;;  %v480_v38 = vld [vmem:[%s1759_s9 + $0x290] sm:$0xff]  ;;  %v988_v39 = vadd.f32 %v860_v23, %v732_v28  ;;  %v863_v41 = vld [vmem:[%s1770_s17 + $0x288] sm:$0xff]  ;;  %v353_v43 = vld [vmem:[%s1751_s28 + $0x298] sm:$0xff] }
  0xcd   : > { %1114 = vst [vmem:[%s1788_s22 + $0x260] sm:$0xff] %v986_v27  ;;  %v734_v40 = vadd.f32 %v606_v30, %v350_v25  ;;  %v608_v42 = vmul.f32 0.5, %v480_v38  ;;  %v481_v44 = vld [vmem:[%s1759_s9 + $0x298] sm:$0xff]  ;;  %1115 = vst [vmem:[%s1788_s22 + $0x268] sm:$0xff] %v987_v33  ;;  %v864_v47 = vld [vmem:[%s1770_s17 + $0x290] sm:$0xff] }
  0xce   : > { %v989_v45 = vadd.f32 %v861_v29, %v733_v34  ;;  %v735_v46 = vadd.f32 %v607_v36, %v351_v31  ;;  %v609_v48 = vmul.f32 0.5, %v481_v44  ;;  %v354_v49 = vld [vmem:[%s1751_s28 + $0x2a0] sm:$0xff]  ;;  %1116 = vst [vmem:[%s1788_s22 + $0x270] sm:$0xff] %v988_v39  ;;  %v865_v53 = vld [vmem:[%s1770_s17 + $0x298] sm:$0xff]  ;;  %v355_v55 = vld [vmem:[%s1751_s28 + $0x2a8] sm:$0xff] }
  0xcf   : > { %v482_v50 = vld [vmem:[%s1759_s9 + $0x2a0] sm:$0xff]  ;;  %v990_v51 = vadd.f32 %v862_v35, %v734_v40  ;;  %v736_v52 = vadd.f32 %v608_v42, %v352_v37  ;;  %v483_v56 = vld [vmem:[%s1759_s9 + $0x2a8] sm:$0xff]  ;;  %v356_v61 = vld [vmem:[%s1751_s28 + $0x2b0] sm:$0xff] }
  0xd0   : > { %v610_v54 = vmul.f32 0.5, %v482_v50  ;;  %1117 = vst [vmem:[%s1788_s22 + $0x278] sm:$0xff] %v989_v45  ;;  %v991_v57 = vadd.f32 %v863_v41, %v735_v46  ;;  %v737_v58 = vadd.f32 %v609_v48, %v353_v43  ;;  %v866_v59 = vld [vmem:[%s1770_s17 + $0x2a0] sm:$0xff]  ;;  %v611_v60 = vmul.f32 0.5, %v483_v56  ;;  %v484_v62 = vld [vmem:[%s1759_s9 + $0x2b0] sm:$0xff]  ;;  %v867_v1 = vld [vmem:[%s1770_s17 + $0x2a8] sm:$0xff] }
  0xd1   : > { %1118 = vst [vmem:[%s1788_s22 + $0x280] sm:$0xff] %v990_v51  ;;  %v992_v63 = vadd.f32 %v864_v47, %v736_v52  ;;  %v612_v2 = vmul.f32 0.5, %v484_v62  ;;  %v357_v3 = vld [vmem:[%s1751_s28 + $0x2b8] sm:$0xff]  ;;  %v868_v7 = vld [vmem:[%s1770_s17 + $0x2b0] sm:$0xff]  ;;  %v358_v9 = vld [vmem:[%s1751_s28 + $0x2c0] sm:$0xff] }
  0xd2   : > { %v738_v0 = vadd.f32 %v610_v54, %v354_v49  ;;  %v485_v4 = vld [vmem:[%s1759_s9 + $0x2b8] sm:$0xff]  ;;  %1119 = vst [vmem:[%s1788_s22 + $0x288] sm:$0xff] %v991_v57  ;;  %v993_v5 = vadd.f32 %v865_v53, %v737_v58  ;;  %v739_v6 = vadd.f32 %v611_v60, %v355_v55  ;;  %v486_v10 = vld [vmem:[%s1759_s9 + $0x2c0] sm:$0xff]  ;;  %v359_v15 = vld [vmem:[%s1751_s28 + $0x2c8] sm:$0xff] }
  0xd3   : > { %v613_v8 = vmul.f32 0.5, %v485_v4  ;;  %1120 = vst [vmem:[%s1788_s22 + $0x290] sm:$0xff] %v992_v63  ;;  %v740_v12 = vadd.f32 %v612_v2, %v356_v61  ;;  %v869_v13 = vld [vmem:[%s1770_s17 + $0x2b8] sm:$0xff]  ;;  %v614_v14 = vmul.f32 0.5, %v486_v10  ;;  %v487_v16 = vld [vmem:[%s1759_s9 + $0x2c8] sm:$0xff]  ;;  %v870_v19 = vld [vmem:[%s1770_s17 + $0x2c0] sm:$0xff] }
  0xd4   : > { %v994_v11 = vadd.f32 %v866_v59, %v738_v0  ;;  %1121 = vst [vmem:[%s1788_s22 + $0x298] sm:$0xff] %v993_v5  ;;  %v995_v17 = vadd.f32 %v867_v1, %v739_v6  ;;  %v615_v20 = vmul.f32 0.5, %v487_v16  ;;  %v360_v21 = vld [vmem:[%s1751_s28 + $0x2d0] sm:$0xff]  ;;  %v871_v25 = vld [vmem:[%s1770_s17 + $0x2c8] sm:$0xff]  ;;  %v361_v27 = vld [vmem:[%s1751_s28 + $0x2d8] sm:$0xff] }
  0xd5   : > { %v741_v18 = vadd.f32 %v613_v8, %v357_v3  ;;  %v488_v22 = vld [vmem:[%s1759_s9 + $0x2d0] sm:$0xff]  ;;  %v996_v23 = vadd.f32 %v868_v7, %v740_v12  ;;  %v742_v24 = vadd.f32 %v614_v14, %v358_v9  ;;  %v489_v28 = vld [vmem:[%s1759_s9 + $0x2d8] sm:$0xff]  ;;  %v362_v33 = vld [vmem:[%s1751_s28 + $0x2e0] sm:$0xff] }
  0xd6   : > { %1122 = vst [vmem:[%s1788_s22 + $0x2a0] sm:$0xff] %v994_v11  ;;  %v616_v26 = vmul.f32 0.5, %v488_v22  ;;  %1123 = vst [vmem:[%s1788_s22 + $0x2a8] sm:$0xff] %v995_v17  ;;  %v743_v30 = vadd.f32 %v615_v20, %v359_v15  ;;  %v872_v31 = vld [vmem:[%s1770_s17 + $0x2d0] sm:$0xff]  ;;  %v617_v32 = vmul.f32 0.5, %v489_v28  ;;  %v490_v34 = vld [vmem:[%s1759_s9 + $0x2e0] sm:$0xff] }
  0xd7   : > { %v997_v29 = vadd.f32 %v869_v13, %v741_v18  ;;  %1124 = vst [vmem:[%s1788_s22 + $0x2b0] sm:$0xff] %v996_v23  ;;  %v998_v35 = vadd.f32 %v870_v19, %v742_v24  ;;  %v873_v37 = vld [vmem:[%s1770_s17 + $0x2d8] sm:$0xff]  ;;  %v618_v38 = vmul.f32 0.5, %v490_v34  ;;  %v363_v39 = vld [vmem:[%s1751_s28 + $0x2e8] sm:$0xff]  ;;  %v874_v43 = vld [vmem:[%s1770_s17 + $0x2e0] sm:$0xff] }
  0xd8   : > { %v744_v36 = vadd.f32 %v616_v26, %v360_v21  ;;  %v491_v40 = vld [vmem:[%s1759_s9 + $0x2e8] sm:$0xff]  ;;  %v999_v41 = vadd.f32 %v871_v25, %v743_v30  ;;  %v745_v42 = vadd.f32 %v617_v32, %v361_v27  ;;  %v364_v45 = vld [vmem:[%s1751_s28 + $0x2f0] sm:$0xff]  ;;  %v365_v51 = vld [vmem:[%s1751_s28 + $0x2f8] sm:$0xff] }
  0xd9   : > { %1125 = vst [vmem:[%s1788_s22 + $0x2b8] sm:$0xff] %v997_v29  ;;  %v619_v44 = vmul.f32 0.5, %v491_v40  ;;  %v492_v46 = vld [vmem:[%s1759_s9 + $0x2f0] sm:$0xff]  ;;  %1126 = vst [vmem:[%s1788_s22 + $0x2c0] sm:$0xff] %v998_v35  ;;  %v746_v48 = vadd.f32 %v618_v38, %v362_v33  ;;  %v875_v49 = vld [vmem:[%s1770_s17 + $0x2e8] sm:$0xff] }
  0xda   : > { %v1000_v47 = vadd.f32 %v872_v31, %v744_v36  ;;  %v620_v50 = vmul.f32 0.5, %v492_v46  ;;  %v493_v52 = vld [vmem:[%s1759_s9 + $0x2f8] sm:$0xff]  ;;  %1127 = vst [vmem:[%s1788_s22 + $0x2c8] sm:$0xff] %v999_v41  ;;  %v1001_v53 = vadd.f32 %v873_v37, %v745_v42  ;;  %v876_v55 = vld [vmem:[%s1770_s17 + $0x2f0] sm:$0xff]  ;;  %v366_v57 = vld [vmem:[%s1751_s28 + $0x300] sm:$0xff] }
  0xdb   : > { %v747_v54 = vadd.f32 %v619_v44, %v363_v39  ;;  %v621_v56 = vmul.f32 0.5, %v493_v52  ;;  %v494_v58 = vld [vmem:[%s1759_s9 + $0x300] sm:$0xff]  ;;  %v1002_v59 = vadd.f32 %v874_v43, %v746_v48  ;;  %v877_v61 = vld [vmem:[%s1770_s17 + $0x2f8] sm:$0xff]  ;;  %v367_v63 = vld [vmem:[%s1751_s28 + $0x308] sm:$0xff] }
  0xdc   : > { %1128 = vst [vmem:[%s1788_s22 + $0x2d0] sm:$0xff] %v1000_v47  ;;  %v748_v60 = vadd.f32 %v620_v50, %v364_v45  ;;  %v622_v62 = vmul.f32 0.5, %v494_v58  ;;  %v495_v0 = vld [vmem:[%s1759_s9 + $0x308] sm:$0xff]  ;;  %1129 = vst [vmem:[%s1788_s22 + $0x2d8] sm:$0xff] %v1001_v53  ;;  %v878_v3 = vld [vmem:[%s1770_s17 + $0x300] sm:$0xff] }
  0xdd   : > { %v1003_v1 = vadd.f32 %v875_v49, %v747_v54  ;;  %v749_v2 = vadd.f32 %v621_v56, %v365_v51  ;;  %v623_v4 = vmul.f32 0.5, %v495_v0  ;;  %v368_v5 = vld [vmem:[%s1751_s28 + $0x310] sm:$0xff]  ;;  %1130 = vst [vmem:[%s1788_s22 + $0x2e0] sm:$0xff] %v1002_v59  ;;  %v879_v9 = vld [vmem:[%s1770_s17 + $0x308] sm:$0xff]  ;;  %v369_v11 = vld [vmem:[%s1751_s28 + $0x318] sm:$0xff] }
  0xde   : > { %v496_v6 = vld [vmem:[%s1759_s9 + $0x310] sm:$0xff]  ;;  %v1004_v7 = vadd.f32 %v876_v55, %v748_v60  ;;  %v750_v8 = vadd.f32 %v622_v62, %v366_v57  ;;  %v497_v12 = vld [vmem:[%s1759_s9 + $0x318] sm:$0xff]  ;;  %v370_v17 = vld [vmem:[%s1751_s28 + $0x320] sm:$0xff] }
  0xdf   : > { %v624_v10 = vmul.f32 0.5, %v496_v6  ;;  %1131 = vst [vmem:[%s1788_s22 + $0x2e8] sm:$0xff] %v1003_v1  ;;  %v1005_v13 = vadd.f32 %v877_v61, %v749_v2  ;;  %v751_v14 = vadd.f32 %v623_v4, %v367_v63  ;;  %v880_v15 = vld [vmem:[%s1770_s17 + $0x310] sm:$0xff]  ;;  %v625_v16 = vmul.f32 0.5, %v497_v12  ;;  %v498_v18 = vld [vmem:[%s1759_s9 + $0x320] sm:$0xff]  ;;  %v881_v21 = vld [vmem:[%s1770_s17 + $0x318] sm:$0xff] }
  0xe0   : > { %1132 = vst [vmem:[%s1788_s22 + $0x2f0] sm:$0xff] %v1004_v7  ;;  %v1006_v19 = vadd.f32 %v878_v3, %v750_v8  ;;  %v626_v22 = vmul.f32 0.5, %v498_v18  ;;  %v371_v23 = vld [vmem:[%s1751_s28 + $0x328] sm:$0xff]  ;;  %v882_v27 = vld [vmem:[%s1770_s17 + $0x320] sm:$0xff]  ;;  %v372_v29 = vld [vmem:[%s1751_s28 + $0x330] sm:$0xff] }
  0xe1   : > { %v752_v20 = vadd.f32 %v624_v10, %v368_v5  ;;  %v499_v24 = vld [vmem:[%s1759_s9 + $0x328] sm:$0xff]  ;;  %1133 = vst [vmem:[%s1788_s22 + $0x2f8] sm:$0xff] %v1005_v13  ;;  %v1007_v25 = vadd.f32 %v879_v9, %v751_v14  ;;  %v753_v26 = vadd.f32 %v625_v16, %v369_v11  ;;  %v500_v30 = vld [vmem:[%s1759_s9 + $0x330] sm:$0xff]  ;;  %v373_v35 = vld [vmem:[%s1751_s28 + $0x338] sm:$0xff] }
  0xe2   : > { %v627_v28 = vmul.f32 0.5, %v499_v24  ;;  %1134 = vst [vmem:[%s1788_s22 + $0x300] sm:$0xff] %v1006_v19  ;;  %v754_v32 = vadd.f32 %v626_v22, %v370_v17  ;;  %v883_v33 = vld [vmem:[%s1770_s17 + $0x328] sm:$0xff]  ;;  %v628_v34 = vmul.f32 0.5, %v500_v30  ;;  %v501_v36 = vld [vmem:[%s1759_s9 + $0x338] sm:$0xff]  ;;  %v884_v39 = vld [vmem:[%s1770_s17 + $0x330] sm:$0xff] }
  0xe3   : > { %v1008_v31 = vadd.f32 %v880_v15, %v752_v20  ;;  %1135 = vst [vmem:[%s1788_s22 + $0x308] sm:$0xff] %v1007_v25  ;;  %v1009_v37 = vadd.f32 %v881_v21, %v753_v26  ;;  %v629_v40 = vmul.f32 0.5, %v501_v36  ;;  %v374_v41 = vld [vmem:[%s1751_s28 + $0x340] sm:$0xff]  ;;  %v885_v45 = vld [vmem:[%s1770_s17 + $0x338] sm:$0xff]  ;;  %v375_v47 = vld [vmem:[%s1751_s28 + $0x348] sm:$0xff] }
  0xe4   : > { %v755_v38 = vadd.f32 %v627_v28, %v371_v23  ;;  %v502_v42 = vld [vmem:[%s1759_s9 + $0x340] sm:$0xff]  ;;  %v1010_v43 = vadd.f32 %v882_v27, %v754_v32  ;;  %v756_v44 = vadd.f32 %v628_v34, %v372_v29  ;;  %v503_v48 = vld [vmem:[%s1759_s9 + $0x348] sm:$0xff]  ;;  %v376_v53 = vld [vmem:[%s1751_s28 + $0x350] sm:$0xff] }
  0xe5   : > { %1136 = vst [vmem:[%s1788_s22 + $0x310] sm:$0xff] %v1008_v31  ;;  %v630_v46 = vmul.f32 0.5, %v502_v42  ;;  %1137 = vst [vmem:[%s1788_s22 + $0x318] sm:$0xff] %v1009_v37  ;;  %v757_v50 = vadd.f32 %v629_v40, %v373_v35  ;;  %v886_v51 = vld [vmem:[%s1770_s17 + $0x340] sm:$0xff]  ;;  %v631_v52 = vmul.f32 0.5, %v503_v48  ;;  %v504_v54 = vld [vmem:[%s1759_s9 + $0x350] sm:$0xff] }
  0xe6   : > { %v1011_v49 = vadd.f32 %v883_v33, %v755_v38  ;;  %1138 = vst [vmem:[%s1788_s22 + $0x320] sm:$0xff] %v1010_v43  ;;  %v1012_v55 = vadd.f32 %v884_v39, %v756_v44  ;;  %v887_v57 = vld [vmem:[%s1770_s17 + $0x348] sm:$0xff]  ;;  %v632_v58 = vmul.f32 0.5, %v504_v54  ;;  %v377_v59 = vld [vmem:[%s1751_s28 + $0x358] sm:$0xff]  ;;  %v888_v63 = vld [vmem:[%s1770_s17 + $0x350] sm:$0xff] }
  0xe7   : > { %v758_v56 = vadd.f32 %v630_v46, %v374_v41  ;;  %v505_v60 = vld [vmem:[%s1759_s9 + $0x358] sm:$0xff]  ;;  %v1013_v61 = vadd.f32 %v885_v45, %v757_v50  ;;  %v759_v62 = vadd.f32 %v631_v52, %v375_v47  ;;  %v378_v1 = vld [vmem:[%s1751_s28 + $0x360] sm:$0xff]  ;;  %v379_v7 = vld [vmem:[%s1751_s28 + $0x368] sm:$0xff] }
  0xe8   : > { %1139 = vst [vmem:[%s1788_s22 + $0x328] sm:$0xff] %v1011_v49  ;;  %v633_v0 = vmul.f32 0.5, %v505_v60  ;;  %v506_v2 = vld [vmem:[%s1759_s9 + $0x360] sm:$0xff]  ;;  %1140 = vst [vmem:[%s1788_s22 + $0x330] sm:$0xff] %v1012_v55  ;;  %v760_v4 = vadd.f32 %v632_v58, %v376_v53  ;;  %v889_v5 = vld [vmem:[%s1770_s17 + $0x358] sm:$0xff] }
  0xe9   : > { %v1014_v3 = vadd.f32 %v886_v51, %v758_v56  ;;  %v634_v6 = vmul.f32 0.5, %v506_v2  ;;  %v507_v8 = vld [vmem:[%s1759_s9 + $0x368] sm:$0xff]  ;;  %1141 = vst [vmem:[%s1788_s22 + $0x338] sm:$0xff] %v1013_v61  ;;  %v1015_v9 = vadd.f32 %v887_v57, %v759_v62  ;;  %v890_v11 = vld [vmem:[%s1770_s17 + $0x360] sm:$0xff]  ;;  %v380_v13 = vld [vmem:[%s1751_s28 + $0x370] sm:$0xff] }
  0xea   : > { %v761_v10 = vadd.f32 %v633_v0, %v377_v59  ;;  %v635_v12 = vmul.f32 0.5, %v507_v8  ;;  %v508_v14 = vld [vmem:[%s1759_s9 + $0x370] sm:$0xff]  ;;  %v1016_v15 = vadd.f32 %v888_v63, %v760_v4  ;;  %v891_v17 = vld [vmem:[%s1770_s17 + $0x368] sm:$0xff]  ;;  %v381_v19 = vld [vmem:[%s1751_s28 + $0x378] sm:$0xff] }
  0xeb   : > { %1142 = vst [vmem:[%s1788_s22 + $0x340] sm:$0xff] %v1014_v3  ;;  %v762_v16 = vadd.f32 %v634_v6, %v378_v1  ;;  %v636_v18 = vmul.f32 0.5, %v508_v14  ;;  %v509_v20 = vld [vmem:[%s1759_s9 + $0x378] sm:$0xff]  ;;  %1143 = vst [vmem:[%s1788_s22 + $0x348] sm:$0xff] %v1015_v9  ;;  %v892_v23 = vld [vmem:[%s1770_s17 + $0x370] sm:$0xff] }
  0xec   : > { %v1017_v21 = vadd.f32 %v889_v5, %v761_v10  ;;  %v763_v22 = vadd.f32 %v635_v12, %v379_v7  ;;  %v637_v24 = vmul.f32 0.5, %v509_v20  ;;  %v382_v25 = vld [vmem:[%s1751_s28 + $0x380] sm:$0xff]  ;;  %1144 = vst [vmem:[%s1788_s22 + $0x350] sm:$0xff] %v1016_v15  ;;  %v893_v29 = vld [vmem:[%s1770_s17 + $0x378] sm:$0xff]  ;;  %v383_v31 = vld [vmem:[%s1751_s28 + $0x388] sm:$0xff] }
  0xed   : > { %v510_v26 = vld [vmem:[%s1759_s9 + $0x380] sm:$0xff]  ;;  %v1018_v27 = vadd.f32 %v890_v11, %v762_v16  ;;  %v764_v28 = vadd.f32 %v636_v18, %v380_v13  ;;  %v511_v32 = vld [vmem:[%s1759_s9 + $0x388] sm:$0xff]  ;;  %v384_v37 = vld [vmem:[%s1751_s28 + $0x390] sm:$0xff] }
  0xee   : > { %v638_v30 = vmul.f32 0.5, %v510_v26  ;;  %1145 = vst [vmem:[%s1788_s22 + $0x358] sm:$0xff] %v1017_v21  ;;  %v1019_v33 = vadd.f32 %v891_v17, %v763_v22  ;;  %v765_v34 = vadd.f32 %v637_v24, %v381_v19  ;;  %v894_v35 = vld [vmem:[%s1770_s17 + $0x380] sm:$0xff]  ;;  %v639_v36 = vmul.f32 0.5, %v511_v32  ;;  %v512_v38 = vld [vmem:[%s1759_s9 + $0x390] sm:$0xff]  ;;  %v895_v41 = vld [vmem:[%s1770_s17 + $0x388] sm:$0xff] }
  0xef   : > { %1146 = vst [vmem:[%s1788_s22 + $0x360] sm:$0xff] %v1018_v27  ;;  %v1020_v39 = vadd.f32 %v892_v23, %v764_v28  ;;  %v640_v42 = vmul.f32 0.5, %v512_v38  ;;  %v385_v43 = vld [vmem:[%s1751_s28 + $0x398] sm:$0xff]  ;;  %v896_v47 = vld [vmem:[%s1770_s17 + $0x390] sm:$0xff]  ;;  %v386_v49 = vld [vmem:[%s1751_s28 + $0x3a0] sm:$0xff] }
  0xf0   : > { %v766_v40 = vadd.f32 %v638_v30, %v382_v25  ;;  %v513_v44 = vld [vmem:[%s1759_s9 + $0x398] sm:$0xff]  ;;  %1147 = vst [vmem:[%s1788_s22 + $0x368] sm:$0xff] %v1019_v33  ;;  %v1021_v45 = vadd.f32 %v893_v29, %v765_v34  ;;  %v767_v46 = vadd.f32 %v639_v36, %v383_v31  ;;  %v514_v50 = vld [vmem:[%s1759_s9 + $0x3a0] sm:$0xff]  ;;  %v387_v55 = vld [vmem:[%s1751_s28 + $0x3a8] sm:$0xff] }
  0xf1   : > { %v641_v48 = vmul.f32 0.5, %v513_v44  ;;  %1148 = vst [vmem:[%s1788_s22 + $0x370] sm:$0xff] %v1020_v39  ;;  %v768_v52 = vadd.f32 %v640_v42, %v384_v37  ;;  %v897_v53 = vld [vmem:[%s1770_s17 + $0x398] sm:$0xff]  ;;  %v642_v54 = vmul.f32 0.5, %v514_v50  ;;  %v515_v56 = vld [vmem:[%s1759_s9 + $0x3a8] sm:$0xff]  ;;  %v898_v59 = vld [vmem:[%s1770_s17 + $0x3a0] sm:$0xff] }
  0xf2   : > { %v1022_v51 = vadd.f32 %v894_v35, %v766_v40  ;;  %1149 = vst [vmem:[%s1788_s22 + $0x378] sm:$0xff] %v1021_v45  ;;  %v1023_v57 = vadd.f32 %v895_v41, %v767_v46  ;;  %v643_v60 = vmul.f32 0.5, %v515_v56  ;;  %v388_v61 = vld [vmem:[%s1751_s28 + $0x3b0] sm:$0xff]  ;;  %v899_v1 = vld [vmem:[%s1770_s17 + $0x3a8] sm:$0xff]  ;;  %v389_v3 = vld [vmem:[%s1751_s28 + $0x3b8] sm:$0xff] }
  0xf3   : > { %v769_v58 = vadd.f32 %v641_v48, %v385_v43  ;;  %v516_v62 = vld [vmem:[%s1759_s9 + $0x3b0] sm:$0xff]  ;;  %v1024_v63 = vadd.f32 %v896_v47, %v768_v52  ;;  %v770_v0 = vadd.f32 %v642_v54, %v386_v49  ;;  %v517_v4 = vld [vmem:[%s1759_s9 + $0x3b8] sm:$0xff]  ;;  %v390_v9 = vld [vmem:[%s1751_s28 + $0x3c0] sm:$0xff] }
  0xf4   : > { %1150 = vst [vmem:[%s1788_s22 + $0x380] sm:$0xff] %v1022_v51  ;;  %v644_v2 = vmul.f32 0.5, %v516_v62  ;;  %1151 = vst [vmem:[%s1788_s22 + $0x388] sm:$0xff] %v1023_v57  ;;  %v771_v6 = vadd.f32 %v643_v60, %v387_v55  ;;  %v900_v7 = vld [vmem:[%s1770_s17 + $0x3b0] sm:$0xff]  ;;  %v645_v8 = vmul.f32 0.5, %v517_v4  ;;  %v518_v10 = vld [vmem:[%s1759_s9 + $0x3c0] sm:$0xff] }
  0xf5   : > { %v1025_v5 = vadd.f32 %v897_v53, %v769_v58  ;;  %1152 = vst [vmem:[%s1788_s22 + $0x390] sm:$0xff] %v1024_v63  ;;  %v1026_v11 = vadd.f32 %v898_v59, %v770_v0  ;;  %v901_v13 = vld [vmem:[%s1770_s17 + $0x3b8] sm:$0xff]  ;;  %v646_v14 = vmul.f32 0.5, %v518_v10  ;;  %v391_v15 = vld [vmem:[%s1751_s28 + $0x3c8] sm:$0xff]  ;;  %v902_v19 = vld [vmem:[%s1770_s17 + $0x3c0] sm:$0xff] }
  0xf6   : > { %v772_v12 = vadd.f32 %v644_v2, %v388_v61  ;;  %v519_v16 = vld [vmem:[%s1759_s9 + $0x3c8] sm:$0xff]  ;;  %v1027_v17 = vadd.f32 %v899_v1, %v771_v6  ;;  %v773_v18 = vadd.f32 %v645_v8, %v389_v3  ;;  %v392_v21 = vld [vmem:[%s1751_s28 + $0x3d0] sm:$0xff]  ;;  %v393_v27 = vld [vmem:[%s1751_s28 + $0x3d8] sm:$0xff] }
  0xf7   : > { %1153 = vst [vmem:[%s1788_s22 + $0x398] sm:$0xff] %v1025_v5  ;;  %v647_v20 = vmul.f32 0.5, %v519_v16  ;;  %v520_v22 = vld [vmem:[%s1759_s9 + $0x3d0] sm:$0xff]  ;;  %1154 = vst [vmem:[%s1788_s22 + $0x3a0] sm:$0xff] %v1026_v11  ;;  %v774_v24 = vadd.f32 %v646_v14, %v390_v9  ;;  %v903_v25 = vld [vmem:[%s1770_s17 + $0x3c8] sm:$0xff] }
  0xf8   : > { %v1028_v23 = vadd.f32 %v900_v7, %v772_v12  ;;  %v648_v26 = vmul.f32 0.5, %v520_v22  ;;  %v521_v28 = vld [vmem:[%s1759_s9 + $0x3d8] sm:$0xff]  ;;  %1155 = vst [vmem:[%s1788_s22 + $0x3a8] sm:$0xff] %v1027_v17  ;;  %v1029_v29 = vadd.f32 %v901_v13, %v773_v18  ;;  %v904_v31 = vld [vmem:[%s1770_s17 + $0x3d0] sm:$0xff]  ;;  %v394_v33 = vld [vmem:[%s1751_s28 + $0x3e0] sm:$0xff] }
  0xf9   : > { %v775_v30 = vadd.f32 %v647_v20, %v391_v15  ;;  %v649_v32 = vmul.f32 0.5, %v521_v28  ;;  %v522_v34 = vld [vmem:[%s1759_s9 + $0x3e0] sm:$0xff]  ;;  %v1030_v35 = vadd.f32 %v902_v19, %v774_v24  ;;  %v905_v37 = vld [vmem:[%s1770_s17 + $0x3d8] sm:$0xff]  ;;  %v395_v39 = vld [vmem:[%s1751_s28 + $0x3e8] sm:$0xff] }
  0xfa   : > { %1156 = vst [vmem:[%s1788_s22 + $0x3b0] sm:$0xff] %v1028_v23  ;;  %v776_v36 = vadd.f32 %v648_v26, %v392_v21  ;;  %v650_v38 = vmul.f32 0.5, %v522_v34  ;;  %v523_v40 = vld [vmem:[%s1759_s9 + $0x3e8] sm:$0xff]  ;;  %1157 = vst [vmem:[%s1788_s22 + $0x3b8] sm:$0xff] %v1029_v29  ;;  %v906_v43 = vld [vmem:[%s1770_s17 + $0x3e0] sm:$0xff] }
  0xfb   : > { %v1031_v41 = vadd.f32 %v903_v25, %v775_v30  ;;  %v777_v42 = vadd.f32 %v649_v32, %v393_v27  ;;  %v651_v44 = vmul.f32 0.5, %v523_v40  ;;  %v396_v45 = vld [vmem:[%s1751_s28 + $0x3f0] sm:$0xff]  ;;  %1158 = vst [vmem:[%s1788_s22 + $0x3c0] sm:$0xff] %v1030_v35  ;;  %v907_v49 = vld [vmem:[%s1770_s17 + $0x3e8] sm:$0xff]  ;;  %v397_v51 = vld [vmem:[%s1751_s28 + $0x3f8] sm:$0xff] }
  0xfc   : > { %v524_v46 = vld [vmem:[%s1759_s9 + $0x3f0] sm:$0xff]  ;;  %v1032_v47 = vadd.f32 %v904_v31, %v776_v36  ;;  %v778_v48 = vadd.f32 %v650_v38, %v394_v33  ;;  %v525_v52 = vld [vmem:[%s1759_s9 + $0x3f8] sm:$0xff] }
  0xfd   : > { %v652_v50 = vmul.f32 0.5, %v524_v46  ;;  %1159 = vst [vmem:[%s1788_s22 + $0x3c8] sm:$0xff] %v1031_v41  ;;  %v1033_v53 = vadd.f32 %v905_v37, %v777_v42  ;;  %v779_v54 = vadd.f32 %v651_v44, %v395_v39  ;;  %v908_v55 = vld [vmem:[%s1770_s17 + $0x3f0] sm:$0xff]  ;;  %v653_v56 = vmul.f32 0.5, %v525_v52  ;;  %v909_v59 = vld [vmem:[%s1770_s17 + $0x3f8] sm:$0xff] }
  0xfe   : > { %1160 = vst [vmem:[%s1788_s22 + $0x3d0] sm:$0xff] %v1032_v47  ;;  %v1034_v57 = vadd.f32 %v906_v43, %v778_v48 }
  0xff   : > { %v780_v58 = vadd.f32 %v652_v50, %v396_v45  ;;  %1161 = vst [vmem:[%s1788_s22 + $0x3d8] sm:$0xff] %v1033_v53  ;;  %v1035_v60 = vadd.f32 %v907_v49, %v779_v54  ;;  %v781_v61 = vadd.f32 %v653_v56, %v397_v51 }
 0x100   : > { %1162 = vst [vmem:[%s1788_s22 + $0x3e0] sm:$0xff] %v1034_v57 }
 0x101   : > { %v1036_v62 = vadd.f32 %v908_v55, %v780_v58  ;;  %1163 = vst [vmem:[%s1788_s22 + $0x3e8] sm:$0xff] %v1035_v60  ;;  %v1037_v63 = vadd.f32 %v909_v59, %v781_v61 }
 0x103   : > { %1164 = vst [vmem:[%s1788_s22 + $0x3f0] sm:$0xff] %v1036_v62  ;;  %1165 = vst [vmem:[%s1788_s22 + $0x3f8] sm:$0xff] %v1037_v63 }
 0x104   : > { %1479 = shalt.err (!%p1476_p6)
}
 0x105   : > { %s1480_s7 = scalar_lea.hbm %s2285_s30, 16384  ;;  %s1484_s10 = scalar_lea.hbm %s2336_s3, 32768 }
 0x106   : > { %p1481_p12 = scmp.ne.s32.totalorder %s2285_s30, %s1480_s7  ;;  %p1485_p4 = scmp.lt.s32.totalorder %s2285_s30, %s2336_s3 }
 0x107   : > { %p1486_p2 = scmp.lt.s32.totalorder %s1484_s10, %s1480_s7 }
 0x108   : > { %p1482_p0 = pnand %p1481_p12, %p2358_p7 }
 0x109   : > { %p1487_p5 = por %p1486_p2, %p1485_p4 }
 0x10a   : > { %p1483_p11 = pneg %p1482_p0 }
 0x10c   : > { %p1488_p13 = pnand %p1487_p5, %p1483_p11 }
 0x10e   : > { %1491 = shalt.err (!%p1488_p13)
}
 0x10f   : > { %s1542_s29 = smov 128   ;;  %s1543_s9 = smov 8  }
 0x110   : > { %1328 = dma.vmem_to_hbm [thread:$0]  (%p2358_p7), %s2287_s25, 16384, %s2285_s30, %s1167_s16, %s1542_s29, %s1542_s29, %s1543_s9  }
 0x111 PF: > { %s1195_s17 = sand.u32 1, %s1522_s12   ;;  %p2359_p8 = scmp.ne.s32.totalorder %s2347_s24, 0 }
 0x112   : > { %p2360_p10 = scmp.ge.s32.totalorder %s1534_s15, 2  ;;  %s1196_s22 = scalar_lea.sflag [#allocation4], %s1195_s17 }
 0x114   : > { %p1341_p1 = pnand %p2360_p10, %p2359_p8 }
 0x116   : > { %p1342_p3 = pneg %p1341_p1 }
 0x118   : > { %1517 = dma.done.wait (%p1342_p3), %s1196_s22, 16384  }
 0x119   : > { %1519 = vsyncadd (%p1342_p3), %s1196_s22, 4294950912  ;;  %p19_p9 = scmp.ge.s32.totalorder %s1589_s18, 4   ;;  %s2361_s12 = smov %s1526_s13 }
 0x11a   : > { %s2362_s13 = smov %s1530_s14  ;;  %s2363_s14 = smov %s1601_s21 }
 0x11b   : > { %s2364_s15 = smov %s1589_s18  ;;  %21 = sbr.rel (!%p19_p9) target bundleno = 10 (0xa), region = 101 }
 0x120   :  { %1201 = vsyncpa [#allocation3], 1 }
 0x121   :  { %1203 = vsyncpa [#allocation3 + $0x1], 1 }
 0x122   :  { %1204 = vsyncpa [#allocation6], 1 }
 0x123   :  { %1206 = vsyncpa [#allocation6 + $0x1], 1 }
 0x124   :  { %1207 = vsyncpa [#allocation4], 1 }
 0x125   :  { %1209 = vsyncpa [#allocation4 + $0x1], 1 }

</bundles_post_ra>
